<compile_context>
chip_gen: v7x
topology: tpu7x:2x2x1
jax: 0.10.0
libtpu: 0.0.40
codegen_flags: <defaults>
</compile_context>

<pallas_src>
import functools

import jax
import jax.numpy as jnp
from jax import lax
from jax.experimental import pallas as pl
from jax.experimental.pallas import tpu as pltpu

_LANE = 128
_VMEM = pl.BlockSpec(memory_space=pltpu.MemorySpace.VMEM)
_MXU_DTYPE = jnp.bfloat16   # matmul operand dtype (accumulation stays f32)


def _round_up(x, m):
    return (x + m - 1) // m * m


# ----------------------------------------------------------------------------
# Fused kernel: lin_in -> [MPNN layer]*L -> layer_norm -> mean_pool -> lin_out
# ----------------------------------------------------------------------------
def _fused_mpnn_kernel(
    x_ref, src_col_ref, tgt_col_ref, tgt_row_ref, ea_ref, pool_ref,
    win_ref, bin_ref,
    w1_ref, b1_ref, s1_ref, t1_ref,
    w2_ref, b2_ref, s2_ref, t2_ref,
    wu1_ref, bu1_ref, su1_ref, tu1_ref,
    wu2_ref, bu2_ref, su2_ref, tu2_ref,
    wout_ref, bout_ref,
    o_ref,
    *, num_layers, hidden_dim, eps,
):
    f32 = jnp.float32

    def bdot(a, b):
        # MXU matmul: bf16 operands, f32 accumulation.
        return jnp.dot(a.astype(_MXU_DTYPE), b.astype(_MXU_DTYPE),
                       preferred_element_type=f32)

    n_edges, hp = ea_ref.shape
    n_nodes = x_ref.shape[0]
    H = hidden_dim

    # One-hot gather / scatter operands built in-kernel from the int32 edge
    # lists (VPU iota + compare): no [E, N] HBM traffic and no transposes.
    iota_en = lax.broadcasted_iota(jnp.int32, (n_edges, n_nodes), 1)
    gsrc = (src_col_ref[...] == iota_en).astype(f32).astype(_MXU_DTYPE)    # [E, N]
    gtgt = (tgt_col_ref[...] == iota_en).astype(f32).astype(_MXU_DTYPE)    # [E, N]
    iota_ne = lax.broadcasted_iota(jnp.int32, (n_nodes, n_edges), 0)
    gtgt_t = (tgt_row_ref[...] == iota_ne).astype(f32).astype(_MXU_DTYPE)  # [N, E]

    ea = ea_ref[...].astype(f32)       # [E, hp], edge_attr at lanes [2H, 2H+edge_dim)
    zeros_shift = jnp.zeros((n_nodes, H), f32)

    # lin_in
    h = bdot(x_ref[...], win_ref[...]) + bin_ref[...]                      # [N, hp]

    # MPNN layers (statically unrolled; all weights stay VMEM-resident).
    for li in range(num_layers):
        # --- message --------------------------------------------------------
        # Packed concat operand [x_i | x_j | edge_attr]: x_i gathered from h
        # (values in lanes [0, H)), x_j gathered from a lane-shifted copy of h
        # (values land in lanes [H, 2H)), edge_attr pre-placed by the wrapper.
        # One matmul against the packed w1 replaces three partial concat dots.
        h_sh = jnp.concatenate([zeros_shift, h[:, :hp - H]], axis=-1)      # h -> lanes [H,2H)
        packed = bdot(gtgt, h) + bdot(gsrc, h_sh) + ea                     # [E, hp]
        z = jnp.maximum((bdot(packed, w1_ref[li]) + b1_ref[li]) * s1_ref[li]
                        + t1_ref[li], 0.0)                                 # [E, mp]
        # Second msg linear is pre-shifted so the message lands in lanes
        # [H, 2H) -- the update concat then needs no lane shuffle at all.
        m = jnp.maximum(bdot(z, w2_ref[li]) + b2_ref[li], 0.0)
        m = m * s2_ref[li] + t2_ref[li]                                    # [E, hp]

        # --- aggregate: scatter-add over edges == plain dot with the [N, E]
        #     one-hot (built directly in that orientation, no transpose) -----
        aggr = bdot(gtgt_t, m)                                             # [N, hp]

        # --- update: packed concat [x | aggr] = h + aggr (disjoint lanes) ---
        pu = h + aggr
        u = jnp.maximum((bdot(pu, wu1_ref[li]) + bu1_ref[li]) * su1_ref[li]
                        + tu1_ref[li], 0.0)                                # [N, mp]
        v = jnp.maximum(bdot(u, wu2_ref[li]) + bu2_ref[li], 0.0)
        v = v * su2_ref[li] + tu2_ref[li]                                  # [N, hp]

        h = h + v                                                          # residual

    # F.layer_norm over the true hidden_dim channels (padded lanes masked).
    mask = (lax.broadcasted_iota(jnp.int32, (1, hp), 1) < H).astype(f32)
    inv_h = 1.0 / float(H)
    mu = jnp.sum(h * mask, axis=-1, keepdims=True) * inv_h
    d = (h - mu) * mask
    var = jnp.sum(d * d, axis=-1, keepdims=True) * inv_h
    hn = d * lax.rsqrt(var + eps)                                          # [N, hp]

    # global_mean_pool (mean weights baked into `pool`) + lin_layer.
    pooled = bdot(pool_ref[...], hn)                                       # [B, hp]
    o_ref[...] = bdot(pooled, wout_ref[...]) + bout_ref[...]               # [B, cp]


# ----------------------------------------------------------------------------
# Parameter preparation: lane-pad / lane-pack, bf16 weights, stack per layer
# ----------------------------------------------------------------------------
def _pad2(a, rows, cols, value=0.0):
    return jnp.pad(a, ((0, rows - a.shape[0]), (0, cols - a.shape[1])),
                   constant_values=value)


def _place(shape, blocks, init=0.0):
    """Array filled with `init` with sub-blocks written at (row, col) offsets."""
    w = jnp.full(shape, init, jnp.float32)
    for r0, c0, a in blocks:
        w = w.at[r0:r0 + a.shape[0], c0:c0 + a.shape[1]].set(a)
    return w


def _prepare_kernel_params(params, ip, hp, mp, cp):
    """Lane-pad / lane-pack weights, cast matmul weights to bf16 and stack the
    per-layer weights on a leading [L, ...] axis.

    Packing layout (H = hidden_dim, D = edge_dim):
      w1  [hp, mp]: rows [0,H) = w1_xi, [H,2H) = w1_xj, [2H,2H+D) = w1_ea
      w2  [mp, hp]: output columns shifted to [H,2H) (so aggr lands next to h)
      wu1 [hp, mp]: rows [0,H) = wu1_x, [H,2H) = wu1_a
    Padded channels stay exactly zero through the network: weights / biases /
    shifts padded with 0, BN scales with 1 (ReLU(0) = 0)."""
    convs = params["convs"]
    H = params["lin_in_w"].shape[1]
    bf = _MXU_DTYPE

    def stack(fn):
        return jnp.stack([fn(p) for p in convs])

    return dict(
        win=_pad2(params["lin_in_w"], ip, hp).astype(bf),
        bin=_pad2(params["lin_in_b"], 1, hp),
        wout=_pad2(params["lin_out_w"], hp, cp).astype(bf),
        bout=_pad2(params["lin_out_b"], 1, cp),
        # mlp_msg
        w1=stack(lambda p: _place((hp, mp), [(0, 0, p["w1_xi"]),
                                             (H, 0, p["w1_xj"]),
                                             (2 * H, 0, p["w1_ea"])]).astype(bf)),
        b1=stack(lambda p: _pad2(p["b1"], 1, mp)),
        s1=stack(lambda p: _pad2(p["s1"], 1, mp, 1.0)),
        t1=stack(lambda p: _pad2(p["t1"], 1, mp)),
        w2=stack(lambda p: _place((mp, hp), [(0, H, p["w2"])]).astype(bf)),
        b2=stack(lambda p: _place((1, hp), [(0, H, p["b2"])])),
        s2=stack(lambda p: _place((1, hp), [(0, H, p["s2"])], init=1.0)),
        t2=stack(lambda p: _place((1, hp), [(0, H, p["t2"])])),
        # upd_msg
        wu1=stack(lambda p: _place((hp, mp), [(0, 0, p["wu1_x"]),
                                              (H, 0, p["wu1_a"])]).astype(bf)),
        bu1=stack(lambda p: _pad2(p["bu1"], 1, mp)),
        su1=stack(lambda p: _pad2(p["su1"], 1, mp, 1.0)),
        tu1=stack(lambda p: _pad2(p["tu1"], 1, mp)),
        wu2=stack(lambda p: _pad2(p["wu2"], mp, hp).astype(bf)),
        bu2=stack(lambda p: _pad2(p["bu2"], 1, hp)),
        su2=stack(lambda p: _pad2(p["su2"], 1, hp, 1.0)),
        tu2=stack(lambda p: _pad2(p["tu2"], 1, hp)),
    )


def _vmem_budget(args, n_nodes, n_edges, out_bytes):
    operand = sum(int(a.size) * a.dtype.itemsize for a in args) + out_bytes
    # Live in-kernel intermediates (generous f32 upper bound): three [E,N]/[N,E]
    # one-hots, ~4 per-edge [E,128] temporaries, ~6 per-node [N,128] temporaries.
    interm = 4 * (3 * n_edges * n_nodes + 4 * n_edges * _LANE + 6 * n_nodes * _LANE)
    want = operand + interm + (8 << 20)      # headroom for Mosaic internal scratch
    try:
        phys = int(getattr(pltpu.get_tpu_info(), "vmem_capacity_bytes", 0)) or (64 << 20)
    except Exception:                        # conservative fallback
        phys = 64 << 20
    cap = (phys * 7) // 8                    # never request the full physical VMEM
    return int(min(cap, max(want, 32 << 20)))


# ----------------------------------------------------------------------------
# Model forward (wrapper only does layout plumbing: padding / packing / pool)
# ----------------------------------------------------------------------------
def mpnn_model_forward(params, x, src, tgt, edge_attr, batch, num_nodes, num_graphs):
    num_layers = len(params["convs"])
    hidden_dim = params["lin_in_w"].shape[1]
    msg_hidden = params["convs"][0]["w2"].shape[0]
    num_classes = params["lin_out_w"].shape[1]
    in_dim = params["lin_in_w"].shape[0]
    edge_dim = params["convs"][0]["w1_ea"].shape[0]
    num_edges = src.shape[0]

    # Lane-padded / packed feature widths.  hp also carries the packed message
    # concat [x_i | x_j | edge_attr], so it covers 2*H + edge_dim lanes.
    hp = max(_round_up(hidden_dim, _LANE),
             _round_up(2 * hidden_dim + edge_dim, _LANE))
    mp = _round_up(msg_hidden, _LANE)
    cp = _round_up(num_classes, _LANE)
    ip = _round_up(in_dim, _LANE)
    bp = _round_up(num_graphs, 8)

    # Integer edge lists (a few KB) replace the dense [E, N] one-hots in HBM;
    # the kernel rebuilds the one-hot blocks with iota + compare.
    src_col = src.astype(jnp.int32)[:, None]     # [E, 1]
    tgt_col = tgt.astype(jnp.int32)[:, None]     # [E, 1]
    tgt_row = tgt.astype(jnp.int32)[None, :]     # [1, E]

    # Lane-dense inputs: pad x once; place edge_attr at lanes [2H, 2H+edge_dim)
    # of the packed message operand (shipped in bf16).
    x_pad = jnp.pad(x, ((0, 0), (0, ip - in_dim)))
    ea_pad = jnp.zeros((num_edges, hp), jnp.float32)
    ea_pad = ea_pad.at[:, 2 * hidden_dim:2 * hidden_dim + edge_dim].set(edge_attr)
    ea_pad = ea_pad.astype(_MXU_DTYPE)

    # global_mean_pool weights (empty-graph guard like scatter-mean).
    onehot_b = (batch[:, None] == jnp.arange(num_graphs)[None, :]).astype(jnp.float32)
    counts = jnp.maximum(onehot_b.sum(axis=0, keepdims=True), 1.0)
    pool = jnp.pad((onehot_b / counts).T, ((0, bp - num_graphs), (0, 0)))  # [Bp, N]

    kp = _prepare_kernel_params(params, ip, hp, mp, cp)

    args = (
        x_pad, src_col, tgt_col, tgt_row, ea_pad, pool,
        kp["win"], kp["bin"],
        kp["w1"], kp["b1"], kp["s1"], kp["t1"],
        kp["w2"], kp["b2"], kp["s2"], kp["t2"],
        kp["wu1"], kp["bu1"], kp["su1"], kp["tu1"],
        kp["wu2"], kp["bu2"], kp["su2"], kp["tu2"],
        kp["wout"], kp["bout"],
    )

    kernel = functools.partial(
        _fused_mpnn_kernel,
        num_layers=num_layers, hidden_dim=hidden_dim, eps=1e-5,
    )

    out = pl.pallas_call(
        kernel,
        out_shape=jax.ShapeDtypeStruct((bp, cp), jnp.float32),
        in_specs=[_VMEM] * len(args),
        out_specs=_VMEM,
        compiler_params=pltpu.CompilerParams(
            vmem_limit_bytes=_vmem_budget(args, num_nodes, num_edges, bp * cp * 4)),
    )(*args)
    return out[:num_graphs, :num_classes]


# ----------------------------------------------------------------------------
# Parameter init (deterministic, PyTorch-like shapes; BN folded to scale/shift)
# ----------------------------------------------------------------------------
def _lin_init(key, fan_in, fan_out):
    kw, kb = jax.random.split(key)
    bound = 1.0 / jnp.sqrt(float(fan_in))
    w = jax.random.uniform(kw, (fan_in, fan_out), jnp.float32, -bound, bound)
    b = jax.random.uniform(kb, (1, fan_out), jnp.float32, -bound, bound)
    return w, b


def _bn_init(key, dim, eps=1e-5):
    kg, kb, km, kv = jax.random.split(key, 4)
    gamma = 1.0 + 0.1 * jax.random.normal(kg, (1, dim), jnp.float32)
    beta = 0.1 * jax.random.normal(kb, (1, dim), jnp.float32)
    rmean = 0.1 * jax.random.normal(km, (1, dim), jnp.float32)
    rvar = 1.0 + 0.1 * jax.random.uniform(kv, (1, dim), jnp.float32)
    scale = gamma / jnp.sqrt(rvar + eps)
    shift = beta - rmean * scale
    return scale, shift


def init_params(key, in_dim, edge_dim, hidden_dim, num_layers,
                msg_hidden=32, num_classes=3):
    keys = jax.random.split(key, 2 + num_layers)
    lin_in_w, lin_in_b = _lin_init(keys[0], in_dim, hidden_dim)
    lin_out_w, lin_out_b = _lin_init(keys[1], hidden_dim, num_classes)
    convs = []
    for li in range(num_layers):
        lk = jax.random.split(keys[2 + li], 8)
        # mlp_msg
        w1, b1 = _lin_init(lk[0], 2 * hidden_dim + edge_dim, msg_hidden)
        s1, t1 = _bn_init(lk[1], msg_hidden)
        w2, b2 = _lin_init(lk[2], msg_hidden, hidden_dim)
        s2, t2 = _bn_init(lk[3], hidden_dim)
        # upd_msg
        wu1, bu1 = _lin_init(lk[4], 2 * hidden_dim, msg_hidden)
        su1, tu1 = _bn_init(lk[5], msg_hidden)
        wu2, bu2 = _lin_init(lk[6], msg_hidden, hidden_dim)
        su2, tu2 = _bn_init(lk[7], hidden_dim)
        convs.append(dict(
            w1_xi=w1[:hidden_dim], w1_xj=w1[hidden_dim:2 * hidden_dim],
            w1_ea=w1[2 * hidden_dim:], b1=b1, s1=s1, t1=t1,
            w2=w2, b2=b2, s2=s2, t2=t2,
            wu1_x=wu1[:hidden_dim], wu1_a=wu1[hidden_dim:], bu1=bu1,
            su1=su1, tu1=tu1, wu2=wu2, bu2=bu2, su2=su2, tu2=tu2,
        ))
    return dict(lin_in_w=lin_in_w, lin_in_b=lin_in_b,
                lin_out_w=lin_out_w, lin_out_b=lin_out_b, convs=convs)


# ----------------------------------------------------------------------------
# Pure-JAX reference (same eval-mode semantics, full f32) for verification
# ----------------------------------------------------------------------------
def reference_forward(params, x, src, tgt, edge_attr, batch, num_nodes, num_graphs):
    h = x @ params["lin_in_w"] + params["lin_in_b"]
    for p in params["convs"]:
        x_i, x_j = h[tgt], h[src]
        z = x_i @ p["w1_xi"] + x_j @ p["w1_xj"] + edge_attr @ p["w1_ea"] + p["b1"]
        z = jnp.maximum(z * p["s1"] + p["t1"], 0.0)
        m = jnp.maximum(z @ p["w2"] + p["b2"], 0.0) * p["s2"] + p["t2"]
        aggr = jnp.zeros((num_nodes, m.shape[1]), jnp.float32).at[tgt].add(m)
        u = (h @ p["wu1_x"] + aggr @ p["wu1_a"] + p["bu1"]) * p["su1"] + p["tu1"]
        u = jnp.maximum(u, 0.0)
        v = jnp.maximum(u @ p["wu2"] + p["bu2"], 0.0) * p["su2"] + p["tu2"]
        h = h + v
    mu = h.mean(-1, keepdims=True)
    var = ((h - mu) ** 2).mean(-1, keepdims=True)
    hn = (h - mu) / jnp.sqrt(var + 1e-5)
    onehot_b = (batch[:, None] == jnp.arange(num_graphs)[None, :]).astype(jnp.float32)
    counts = jnp.maximum(onehot_b.sum(axis=0, keepdims=True), 1.0)
    pooled = (onehot_b / counts).T @ hn
    return pooled @ params["lin_out_w"] + params["lin_out_b"]


if __name__ == "__main__":
    key = jax.random.PRNGKey(0)
    in_dim, edge_dim, hidden_dim, num_layers = 4, 2, 32, 3
    nodes_per_graph, num_graphs = 8, 2
    edges_per_graph = 16
    N = nodes_per_graph * num_graphs
    E = edges_per_graph * num_graphs

    k_x, k_ea, k_src, k_tgt, k_p = jax.random.split(key, 5)
    x = jax.random.normal(k_x, (N, in_dim), jnp.float32)                 # data.x
    edge_attr = jax.random.normal(k_ea, (E, edge_dim), jnp.float32)      # data.edge_deltaR
    offs = (jnp.arange(num_graphs) * nodes_per_graph)[:, None]
    src = (jax.random.randint(k_src, (num_graphs, edges_per_graph), 0,
                              nodes_per_graph) + offs).reshape(-1)       # edge_index[0]
    tgt = (jax.random.randint(k_tgt, (num_graphs, edges_per_graph), 0,
                              nodes_per_graph) + offs).reshape(-1)       # edge_index[1]
    batch = jnp.repeat(jnp.arange(num_graphs), nodes_per_graph)          # data.batch

    params = init_params(k_p, in_dim, edge_dim, hidden_dim, num_layers)

    out = mpnn_model_forward(params, x, src, tgt, edge_attr, batch, N, num_graphs)
    out = jax.block_until_ready(out)
    assert out.shape == (num_graphs, 3), out.shape

    ref = reference_forward(params, x, src, tgt, edge_attr, batch, N, num_graphs)
    # bf16 MXU operands (f32 accumulation) => ~1%-level numerical differences
    # vs the pure-f32 reference; tolerance loosened accordingly.
    if not bool(jnp.allclose(out, ref, rtol=5e-2, atol=5e-2)):
        raise AssertionError(f"mismatch: pallas={out} ref={ref}")

    print("KERNEL_OK")
</pallas_src>

<mosaic_0001>
module attributes {stable_mosaic.version = 11 : i64} {
  func.func @_fused_mpnn_kernel(%arg0: memref<16x128xf32, #tpu.memory_space<vmem>>, %arg1: memref<32x1xi32, #tpu.memory_space<vmem>>, %arg2: memref<32x1xi32, #tpu.memory_space<vmem>>, %arg3: memref<1x32xi32, #tpu.memory_space<vmem>>, %arg4: memref<32x128xbf16, #tpu.memory_space<vmem>>, %arg5: memref<8x16xf32, #tpu.memory_space<vmem>>, %arg6: memref<128x128xbf16, #tpu.memory_space<vmem>>, %arg7: memref<1x128xf32, #tpu.memory_space<vmem>>, %arg8: memref<3x128x128xbf16, #tpu.memory_space<vmem>>, %arg9: memref<3x1x128xf32, #tpu.memory_space<vmem>>, %arg10: memref<3x1x128xf32, #tpu.memory_space<vmem>>, %arg11: memref<3x1x128xf32, #tpu.memory_space<vmem>>, %arg12: memref<3x128x128xbf16, #tpu.memory_space<vmem>>, %arg13: memref<3x1x128xf32, #tpu.memory_space<vmem>>, %arg14: memref<3x1x128xf32, #tpu.memory_space<vmem>>, %arg15: memref<3x1x128xf32, #tpu.memory_space<vmem>>, %arg16: memref<3x128x128xbf16, #tpu.memory_space<vmem>>, %arg17: memref<3x1x128xf32, #tpu.memory_space<vmem>>, %arg18: memref<3x1x128xf32, #tpu.memory_space<vmem>>, %arg19: memref<3x1x128xf32, #tpu.memory_space<vmem>>, %arg20: memref<3x128x128xbf16, #tpu.memory_space<vmem>>, %arg21: memref<3x1x128xf32, #tpu.memory_space<vmem>>, %arg22: memref<3x1x128xf32, #tpu.memory_space<vmem>>, %arg23: memref<3x1x128xf32, #tpu.memory_space<vmem>>, %arg24: memref<128x128xbf16, #tpu.memory_space<vmem>>, %arg25: memref<1x128xf32, #tpu.memory_space<vmem>>, %arg26: memref<8x128xf32, #tpu.memory_space<vmem>>) attributes {dimension_semantics = [], scalar_prefetch = 0 : i64, scratch_operands = 0 : i64, tpu.core_type = #tpu.core_type<tc>} {
    %0 = tpu.iota {dimensions = array<i32: 1>} : vector<32x16xi32>
    %c0 = arith.constant 0 : index
    %c0_0 = arith.constant 0 : index
    %1 = vector.load %arg1[%c0, %c0_0] : memref<32x1xi32, #tpu.memory_space<vmem>>, vector<32x1xi32>
    %2 = vector.broadcast %1 : vector<32x1xi32> to vector<32x16xi32>
    %3 = arith.cmpi eq, %2, %0 : vector<32x16xi32>
    %4 = arith.extui %3 : vector<32x16xi1> to vector<32x16xi32>
    %5 = arith.sitofp %4 : vector<32x16xi32> to vector<32x16xf32>
    %6 = arith.truncf %5 : vector<32x16xf32> to vector<32x16xbf16>
    %c0_1 = arith.constant 0 : index
    %c0_2 = arith.constant 0 : index
    %7 = vector.load %arg2[%c0_1, %c0_2] : memref<32x1xi32, #tpu.memory_space<vmem>>, vector<32x1xi32>
    %8 = vector.broadcast %7 : vector<32x1xi32> to vector<32x16xi32>
    %9 = arith.cmpi eq, %8, %0 : vector<32x16xi32>
    %10 = arith.extui %9 : vector<32x16xi1> to vector<32x16xi32>
    %11 = arith.sitofp %10 : vector<32x16xi32> to vector<32x16xf32>
    %12 = arith.truncf %11 : vector<32x16xf32> to vector<32x16xbf16>
    %13 = tpu.iota {dimensions = array<i32: 0>} : vector<16x32xi32>
    %c0_3 = arith.constant 0 : index
    %c0_4 = arith.constant 0 : index
    %14 = vector.load %arg3[%c0_3, %c0_4] : memref<1x32xi32, #tpu.memory_space<vmem>>, vector<1x32xi32>
    %15 = vector.broadcast %14 : vector<1x32xi32> to vector<16x32xi32>
    %16 = arith.cmpi eq, %15, %13 : vector<16x32xi32>
    %17 = arith.extui %16 : vector<16x32xi1> to vector<16x32xi32>
    %18 = arith.sitofp %17 : vector<16x32xi32> to vector<16x32xf32>
    %19 = arith.truncf %18 : vector<16x32xf32> to vector<16x32xbf16>
    %c0_5 = arith.constant 0 : index
    %c0_6 = arith.constant 0 : index
    %20 = vector.load %arg4[%c0_5, %c0_6] : memref<32x128xbf16, #tpu.memory_space<vmem>>, vector<32x128xbf16>
    %21 = arith.extf %20 : vector<32x128xbf16> to vector<32x128xf32>
    %cst = arith.constant 0.000000e+00 : f32
    %22 = vector.broadcast %cst : f32 to vector<16x32xf32>
    %c0_7 = arith.constant 0 : index
    %c0_8 = arith.constant 0 : index
    %23 = vector.load %arg0[%c0_7, %c0_8] : memref<16x128xf32, #tpu.memory_space<vmem>>, vector<16x128xf32>
    %c0_9 = arith.constant 0 : index
    %c0_10 = arith.constant 0 : index
    %24 = vector.load %arg6[%c0_9, %c0_10] : memref<128x128xbf16, #tpu.memory_space<vmem>>, vector<128x128xbf16>
    %25 = arith.truncf %23 : vector<16x128xf32> to vector<16x128xbf16>
    %cst_11 = arith.constant dense<0.000000e+00> : vector<16x128xf32>
    %26 = tpu.matmul %25, %24, %cst_11 {dimension_numbers = #tpu.dot_dimension_numbers<[1], [0], [0], [1], [0, 0, 1, 1], [], []>} : vector<16x128xbf16>, vector<128x128xbf16>, vector<16x128xf32> -> vector<16x128xf32>
    %c0_12 = arith.constant 0 : index
    %c0_13 = arith.constant 0 : index
    %27 = vector.load %arg7[%c0_12, %c0_13] : memref<1x128xf32, #tpu.memory_space<vmem>>, vector<1x128xf32>
    %28 = vector.broadcast %27 : vector<1x128xf32> to vector<16x128xf32>
    %29 = arith.addf %26, %28 : vector<16x128xf32>
    %30 = vector.extract_strided_slice %29 {offsets = [0, 0], sizes = [16, 96], strides = [1, 1]} : vector<16x128xf32> to vector<16x96xf32>
    %31 = tpu.concatenate %22, %30 in 1 : vector<16x32xf32>, vector<16x96xf32> -> vector<16x128xf32>
    %32 = arith.truncf %29 : vector<16x128xf32> to vector<16x128xbf16>
    %cst_14 = arith.constant dense<0.000000e+00> : vector<32x128xf32>
    %33 = tpu.matmul %12, %32, %cst_14 {dimension_numbers = #tpu.dot_dimension_numbers<[1], [0], [0], [1], [0, 0, 1, 1], [], []>} : vector<32x16xbf16>, vector<16x128xbf16>, vector<32x128xf32> -> vector<32x128xf32>
    %34 = arith.truncf %31 : vector<16x128xf32> to vector<16x128xbf16>
    %cst_15 = arith.constant dense<0.000000e+00> : vector<32x128xf32>
    %35 = tpu.matmul %6, %34, %cst_15 {dimension_numbers = #tpu.dot_dimension_numbers<[1], [0], [0], [1], [0, 0, 1, 1], [], []>} : vector<32x16xbf16>, vector<16x128xbf16>, vector<32x128xf32> -> vector<32x128xf32>
    %36 = arith.addf %33, %35 : vector<32x128xf32>
    %37 = arith.addf %36, %21 : vector<32x128xf32>
    %c0_16 = arith.constant 0 : index
    %c0_17 = arith.constant 0 : index
    %c0_18 = arith.constant 0 : index
    %38 = vector.load %arg8[%c0_16, %c0_17, %c0_18] : memref<3x128x128xbf16, #tpu.memory_space<vmem>>, vector<1x128x128xbf16>
    %39 = vector.shape_cast %38 : vector<1x128x128xbf16> to vector<128x128xbf16>
    %40 = arith.truncf %37 : vector<32x128xf32> to vector<32x128xbf16>
    %cst_19 = arith.constant dense<0.000000e+00> : vector<32x128xf32>
    %41 = tpu.matmul %40, %39, %cst_19 {dimension_numbers = #tpu.dot_dimension_numbers<[1], [0], [0], [1], [0, 0, 1, 1], [], []>} : vector<32x128xbf16>, vector<128x128xbf16>, vector<32x128xf32> -> vector<32x128xf32>
    %c0_20 = arith.constant 0 : index
    %c0_21 = arith.constant 0 : index
    %c0_22 = arith.constant 0 : index
    %42 = vector.load %arg9[%c0_20, %c0_21, %c0_22] : memref<3x1x128xf32, #tpu.memory_space<vmem>>, vector<1x1x128xf32>
    %43 = vector.shape_cast %42 : vector<1x1x128xf32> to vector<1x128xf32>
    %44 = vector.broadcast %43 : vector<1x128xf32> to vector<32x128xf32>
    %45 = arith.addf %41, %44 : vector<32x128xf32>
    %c0_23 = arith.constant 0 : index
    %c0_24 = arith.constant 0 : index
    %c0_25 = arith.constant 0 : index
    %46 = vector.load %arg10[%c0_23, %c0_24, %c0_25] : memref<3x1x128xf32, #tpu.memory_space<vmem>>, vector<1x1x128xf32>
    %47 = vector.shape_cast %46 : vector<1x1x128xf32> to vector<1x128xf32>
    %48 = vector.broadcast %47 : vector<1x128xf32> to vector<32x128xf32>
    %49 = arith.mulf %45, %48 : vector<32x128xf32>
    %c0_26 = arith.constant 0 : index
    %c0_27 = arith.constant 0 : index
    %c0_28 = arith.constant 0 : index
    %50 = vector.load %arg11[%c0_26, %c0_27, %c0_28] : memref<3x1x128xf32, #tpu.memory_space<vmem>>, vector<1x1x128xf32>
    %51 = vector.shape_cast %50 : vector<1x1x128xf32> to vector<1x128xf32>
    %52 = vector.broadcast %51 : vector<1x128xf32> to vector<32x128xf32>
    %53 = arith.addf %49, %52 : vector<32x128xf32>
    %cst_29 = arith.constant 0.000000e+00 : f32
    %54 = vector.broadcast %cst_29 : f32 to vector<32x128xf32>
    %55 = arith.maximumf %53, %54 : vector<32x128xf32>
    %c0_30 = arith.constant 0 : index
    %c0_31 = arith.constant 0 : index
    %c0_32 = arith.constant 0 : index
    %56 = vector.load %arg12[%c0_30, %c0_31, %c0_32] : memref<3x128x128xbf16, #tpu.memory_space<vmem>>, vector<1x128x128xbf16>
    %57 = vector.shape_cast %56 : vector<1x128x128xbf16> to vector<128x128xbf16>
    %58 = arith.truncf %55 : vector<32x128xf32> to vector<32x128xbf16>
    %cst_33 = arith.constant dense<0.000000e+00> : vector<32x128xf32>
    %59 = tpu.matmul %58, %57, %cst_33 {dimension_numbers = #tpu.dot_dimension_numbers<[1], [0], [0], [1], [0, 0, 1, 1], [], []>} : vector<32x128xbf16>, vector<128x128xbf16>, vector<32x128xf32> -> vector<32x128xf32>
    %c0_34 = arith.constant 0 : index
    %c0_35 = arith.constant 0 : index
    %c0_36 = arith.constant 0 : index
    %60 = vector.load %arg13[%c0_34, %c0_35, %c0_36] : memref<3x1x128xf32, #tpu.memory_space<vmem>>, vector<1x1x128xf32>
    %61 = vector.shape_cast %60 : vector<1x1x128xf32> to vector<1x128xf32>
    %62 = vector.broadcast %61 : vector<1x128xf32> to vector<32x128xf32>
    %63 = arith.addf %59, %62 : vector<32x128xf32>
    %cst_37 = arith.constant 0.000000e+00 : f32
    %64 = vector.broadcast %cst_37 : f32 to vector<32x128xf32>
    %65 = arith.maximumf %63, %64 : vector<32x128xf32>
    %c0_38 = arith.constant 0 : index
    %c0_39 = arith.constant 0 : index
    %c0_40 = arith.constant 0 : index
    %66 = vector.load %arg14[%c0_38, %c0_39, %c0_40] : memref<3x1x128xf32, #tpu.memory_space<vmem>>, vector<1x1x128xf32>
    %67 = vector.shape_cast %66 : vector<1x1x128xf32> to vector<1x128xf32>
    %68 = vector.broadcast %67 : vector<1x128xf32> to vector<32x128xf32>
    %69 = arith.mulf %65, %68 : vector<32x128xf32>
    %c0_41 = arith.constant 0 : index
    %c0_42 = arith.constant 0 : index
    %c0_43 = arith.constant 0 : index
    %70 = vector.load %arg15[%c0_41, %c0_42, %c0_43] : memref<3x1x128xf32, #tpu.memory_space<vmem>>, vector<1x1x128xf32>
    %71 = vector.shape_cast %70 : vector<1x1x128xf32> to vector<1x128xf32>
    %72 = vector.broadcast %71 : vector<1x128xf32> to vector<32x128xf32>
    %73 = arith.addf %69, %72 : vector<32x128xf32>
    %74 = arith.truncf %73 : vector<32x128xf32> to vector<32x128xbf16>
    %cst_44 = arith.constant dense<0.000000e+00> : vector<16x128xf32>
    %75 = tpu.matmul %19, %74, %cst_44 {dimension_numbers = #tpu.dot_dimension_numbers<[1], [0], [0], [1], [0, 0, 1, 1], [], []>} : vector<16x32xbf16>, vector<32x128xbf16>, vector<16x128xf32> -> vector<16x128xf32>
    %76 = arith.addf %29, %75 : vector<16x128xf32>
    %c0_45 = arith.constant 0 : index
    %c0_46 = arith.constant 0 : index
    %c0_47 = arith.constant 0 : index
    %77 = vector.load %arg16[%c0_45, %c0_46, %c0_47] : memref<3x128x128xbf16, #tpu.memory_space<vmem>>, vector<1x128x128xbf16>
    %78 = vector.shape_cast %77 : vector<1x128x128xbf16> to vector<128x128xbf16>
    %79 = arith.truncf %76 : vector<16x128xf32> to vector<16x128xbf16>
    %cst_48 = arith.constant dense<0.000000e+00> : vector<16x128xf32>
    %80 = tpu.matmul %79, %78, %cst_48 {dimension_numbers = #tpu.dot_dimension_numbers<[1], [0], [0], [1], [0, 0, 1, 1], [], []>} : vector<16x128xbf16>, vector<128x128xbf16>, vector<16x128xf32> -> vector<16x128xf32>
    %c0_49 = arith.constant 0 : index
    %c0_50 = arith.constant 0 : index
    %c0_51 = arith.constant 0 : index
    %81 = vector.load %arg17[%c0_49, %c0_50, %c0_51] : memref<3x1x128xf32, #tpu.memory_space<vmem>>, vector<1x1x128xf32>
    %82 = vector.shape_cast %81 : vector<1x1x128xf32> to vector<1x128xf32>
    %83 = vector.broadcast %82 : vector<1x128xf32> to vector<16x128xf32>
    %84 = arith.addf %80, %83 : vector<16x128xf32>
    %c0_52 = arith.constant 0 : index
    %c0_53 = arith.constant 0 : index
    %c0_54 = arith.constant 0 : index
    %85 = vector.load %arg18[%c0_52, %c0_53, %c0_54] : memref<3x1x128xf32, #tpu.memory_space<vmem>>, vector<1x1x128xf32>
    %86 = vector.shape_cast %85 : vector<1x1x128xf32> to vector<1x128xf32>
    %87 = vector.broadcast %86 : vector<1x128xf32> to vector<16x128xf32>
    %88 = arith.mulf %84, %87 : vector<16x128xf32>
    %c0_55 = arith.constant 0 : index
    %c0_56 = arith.constant 0 : index
    %c0_57 = arith.constant 0 : index
    %89 = vector.load %arg19[%c0_55, %c0_56, %c0_57] : memref<3x1x128xf32, #tpu.memory_space<vmem>>, vector<1x1x128xf32>
    %90 = vector.shape_cast %89 : vector<1x1x128xf32> to vector<1x128xf32>
    %91 = vector.broadcast %90 : vector<1x128xf32> to vector<16x128xf32>
    %92 = arith.addf %88, %91 : vector<16x128xf32>
    %cst_58 = arith.constant 0.000000e+00 : f32
    %93 = vector.broadcast %cst_58 : f32 to vector<16x128xf32>
    %94 = arith.maximumf %92, %93 : vector<16x128xf32>
    %c0_59 = arith.constant 0 : index
    %c0_60 = arith.constant 0 : index
    %c0_61 = arith.constant 0 : index
    %95 = vector.load %arg20[%c0_59, %c0_60, %c0_61] : memref<3x128x128xbf16, #tpu.memory_space<vmem>>, vector<1x128x128xbf16>
    %96 = vector.shape_cast %95 : vector<1x128x128xbf16> to vector<128x128xbf16>
    %97 = arith.truncf %94 : vector<16x128xf32> to vector<16x128xbf16>
    %cst_62 = arith.constant dense<0.000000e+00> : vector<16x128xf32>
    %98 = tpu.matmul %97, %96, %cst_62 {dimension_numbers = #tpu.dot_dimension_numbers<[1], [0], [0], [1], [0, 0, 1, 1], [], []>} : vector<16x128xbf16>, vector<128x128xbf16>, vector<16x128xf32> -> vector<16x128xf32>
    %c0_63 = arith.constant 0 : index
    %c0_64 = arith.constant 0 : index
    %c0_65 = arith.constant 0 : index
    %99 = vector.load %arg21[%c0_63, %c0_64, %c0_65] : memref<3x1x128xf32, #tpu.memory_space<vmem>>, vector<1x1x128xf32>
    %100 = vector.shape_cast %99 : vector<1x1x128xf32> to vector<1x128xf32>
    %101 = vector.broadcast %100 : vector<1x128xf32> to vector<16x128xf32>
    %102 = arith.addf %98, %101 : vector<16x128xf32>
    %cst_66 = arith.constant 0.000000e+00 : f32
    %103 = vector.broadcast %cst_66 : f32 to vector<16x128xf32>
    %104 = arith.maximumf %102, %103 : vector<16x128xf32>
    %c0_67 = arith.constant 0 : index
    %c0_68 = arith.constant 0 : index
    %c0_69 = arith.constant 0 : index
    %105 = vector.load %arg22[%c0_67, %c0_68, %c0_69] : memref<3x1x128xf32, #tpu.memory_space<vmem>>, vector<1x1x128xf32>
    %106 = vector.shape_cast %105 : vector<1x1x128xf32> to vector<1x128xf32>
    %107 = vector.broadcast %106 : vector<1x128xf32> to vector<16x128xf32>
    %108 = arith.mulf %104, %107 : vector<16x128xf32>
    %c0_70 = arith.constant 0 : index
    %c0_71 = arith.constant 0 : index
    %c0_72 = arith.constant 0 : index
    %109 = vector.load %arg23[%c0_70, %c0_71, %c0_72] : memref<3x1x128xf32, #tpu.memory_space<vmem>>, vector<1x1x128xf32>
    %110 = vector.shape_cast %109 : vector<1x1x128xf32> to vector<1x128xf32>
    %111 = vector.broadcast %110 : vector<1x128xf32> to vector<16x128xf32>
    %112 = arith.addf %108, %111 : vector<16x128xf32>
    %113 = arith.addf %29, %112 : vector<16x128xf32>
    %114 = vector.extract_strided_slice %113 {offsets = [0, 0], sizes = [16, 96], strides = [1, 1]} : vector<16x128xf32> to vector<16x96xf32>
    %115 = tpu.concatenate %22, %114 in 1 : vector<16x32xf32>, vector<16x96xf32> -> vector<16x128xf32>
    %116 = arith.truncf %113 : vector<16x128xf32> to vector<16x128xbf16>
    %cst_73 = arith.constant dense<0.000000e+00> : vector<32x128xf32>
    %117 = tpu.matmul %12, %116, %cst_73 {dimension_numbers = #tpu.dot_dimension_numbers<[1], [0], [0], [1], [0, 0, 1, 1], [], []>} : vector<32x16xbf16>, vector<16x128xbf16>, vector<32x128xf32> -> vector<32x128xf32>
    %118 = arith.truncf %115 : vector<16x128xf32> to vector<16x128xbf16>
    %cst_74 = arith.constant dense<0.000000e+00> : vector<32x128xf32>
    %119 = tpu.matmul %6, %118, %cst_74 {dimension_numbers = #tpu.dot_dimension_numbers<[1], [0], [0], [1], [0, 0, 1, 1], [], []>} : vector<32x16xbf16>, vector<16x128xbf16>, vector<32x128xf32> -> vector<32x128xf32>
    %120 = arith.addf %117, %119 : vector<32x128xf32>
    %121 = arith.addf %120, %21 : vector<32x128xf32>
    %c1 = arith.constant 1 : index
    %c0_75 = arith.constant 0 : index
    %c0_76 = arith.constant 0 : index
    %122 = vector.load %arg8[%c1, %c0_75, %c0_76] : memref<3x128x128xbf16, #tpu.memory_space<vmem>>, vector<1x128x128xbf16>
    %123 = vector.shape_cast %122 : vector<1x128x128xbf16> to vector<128x128xbf16>
    %124 = arith.truncf %121 : vector<32x128xf32> to vector<32x128xbf16>
    %cst_77 = arith.constant dense<0.000000e+00> : vector<32x128xf32>
    %125 = tpu.matmul %124, %123, %cst_77 {dimension_numbers = #tpu.dot_dimension_numbers<[1], [0], [0], [1], [0, 0, 1, 1], [], []>} : vector<32x128xbf16>, vector<128x128xbf16>, vector<32x128xf32> -> vector<32x128xf32>
    %c1_78 = arith.constant 1 : index
    %c0_79 = arith.constant 0 : index
    %c0_80 = arith.constant 0 : index
    %126 = vector.load %arg9[%c1_78, %c0_79, %c0_80] : memref<3x1x128xf32, #tpu.memory_space<vmem>>, vector<1x1x128xf32>
    %127 = vector.shape_cast %126 : vector<1x1x128xf32> to vector<1x128xf32>
    %128 = vector.broadcast %127 : vector<1x128xf32> to vector<32x128xf32>
    %129 = arith.addf %125, %128 : vector<32x128xf32>
    %c1_81 = arith.constant 1 : index
    %c0_82 = arith.constant 0 : index
    %c0_83 = arith.constant 0 : index
    %130 = vector.load %arg10[%c1_81, %c0_82, %c0_83] : memref<3x1x128xf32, #tpu.memory_space<vmem>>, vector<1x1x128xf32>
    %131 = vector.shape_cast %130 : vector<1x1x128xf32> to vector<1x128xf32>
    %132 = vector.broadcast %131 : vector<1x128xf32> to vector<32x128xf32>
    %133 = arith.mulf %129, %132 : vector<32x128xf32>
    %c1_84 = arith.constant 1 : index
    %c0_85 = arith.constant 0 : index
    %c0_86 = arith.constant 0 : index
    %134 = vector.load %arg11[%c1_84, %c0_85, %c0_86] : memref<3x1x128xf32, #tpu.memory_space<vmem>>, vector<1x1x128xf32>
    %135 = vector.shape_cast %134 : vector<1x1x128xf32> to vector<1x128xf32>
    %136 = vector.broadcast %135 : vector<1x128xf32> to vector<32x128xf32>
    %137 = arith.addf %133, %136 : vector<32x128xf32>
    %cst_87 = arith.constant 0.000000e+00 : f32
    %138 = vector.broadcast %cst_87 : f32 to vector<32x128xf32>
    %139 = arith.maximumf %137, %138 : vector<32x128xf32>
    %c1_88 = arith.constant 1 : index
    %c0_89 = arith.constant 0 : index
    %c0_90 = arith.constant 0 : index
    %140 = vector.load %arg12[%c1_88, %c0_89, %c0_90] : memref<3x128x128xbf16, #tpu.memory_space<vmem>>, vector<1x128x128xbf16>
    %141 = vector.shape_cast %140 : vector<1x128x128xbf16> to vector<128x128xbf16>
    %142 = arith.truncf %139 : vector<32x128xf32> to vector<32x128xbf16>
    %cst_91 = arith.constant dense<0.000000e+00> : vector<32x128xf32>
    %143 = tpu.matmul %142, %141, %cst_91 {dimension_numbers = #tpu.dot_dimension_numbers<[1], [0], [0], [1], [0, 0, 1, 1], [], []>} : vector<32x128xbf16>, vector<128x128xbf16>, vector<32x128xf32> -> vector<32x128xf32>
    %c1_92 = arith.constant 1 : index
    %c0_93 = arith.constant 0 : index
    %c0_94 = arith.constant 0 : index
    %144 = vector.load %arg13[%c1_92, %c0_93, %c0_94] : memref<3x1x128xf32, #tpu.memory_space<vmem>>, vector<1x1x128xf32>
    %145 = vector.shape_cast %144 : vector<1x1x128xf32> to vector<1x128xf32>
    %146 = vector.broadcast %145 : vector<1x128xf32> to vector<32x128xf32>
    %147 = arith.addf %143, %146 : vector<32x128xf32>
    %cst_95 = arith.constant 0.000000e+00 : f32
    %148 = vector.broadcast %cst_95 : f32 to vector<32x128xf32>
    %149 = arith.maximumf %147, %148 : vector<32x128xf32>
    %c1_96 = arith.constant 1 : index
    %c0_97 = arith.constant 0 : index
    %c0_98 = arith.constant 0 : index
    %150 = vector.load %arg14[%c1_96, %c0_97, %c0_98] : memref<3x1x128xf32, #tpu.memory_space<vmem>>, vector<1x1x128xf32>
    %151 = vector.shape_cast %150 : vector<1x1x128xf32> to vector<1x128xf32>
    %152 = vector.broadcast %151 : vector<1x128xf32> to vector<32x128xf32>
    %153 = arith.mulf %149, %152 : vector<32x128xf32>
    %c1_99 = arith.constant 1 : index
    %c0_100 = arith.constant 0 : index
    %c0_101 = arith.constant 0 : index
    %154 = vector.load %arg15[%c1_99, %c0_100, %c0_101] : memref<3x1x128xf32, #tpu.memory_space<vmem>>, vector<1x1x128xf32>
    %155 = vector.shape_cast %154 : vector<1x1x128xf32> to vector<1x128xf32>
    %156 = vector.broadcast %155 : vector<1x128xf32> to vector<32x128xf32>
    %157 = arith.addf %153, %156 : vector<32x128xf32>
    %158 = arith.truncf %157 : vector<32x128xf32> to vector<32x128xbf16>
    %cst_102 = arith.constant dense<0.000000e+00> : vector<16x128xf32>
    %159 = tpu.matmul %19, %158, %cst_102 {dimension_numbers = #tpu.dot_dimension_numbers<[1], [0], [0], [1], [0, 0, 1, 1], [], []>} : vector<16x32xbf16>, vector<32x128xbf16>, vector<16x128xf32> -> vector<16x128xf32>
    %160 = arith.addf %113, %159 : vector<16x128xf32>
    %c1_103 = arith.constant 1 : index
    %c0_104 = arith.constant 0 : index
    %c0_105 = arith.constant 0 : index
    %161 = vector.load %arg16[%c1_103, %c0_104, %c0_105] : memref<3x128x128xbf16, #tpu.memory_space<vmem>>, vector<1x128x128xbf16>
    %162 = vector.shape_cast %161 : vector<1x128x128xbf16> to vector<128x128xbf16>
    %163 = arith.truncf %160 : vector<16x128xf32> to vector<16x128xbf16>
    %cst_106 = arith.constant dense<0.000000e+00> : vector<16x128xf32>
    %164 = tpu.matmul %163, %162, %cst_106 {dimension_numbers = #tpu.dot_dimension_numbers<[1], [0], [0], [1], [0, 0, 1, 1], [], []>} : vector<16x128xbf16>, vector<128x128xbf16>, vector<16x128xf32> -> vector<16x128xf32>
    %c1_107 = arith.constant 1 : index
    %c0_108 = arith.constant 0 : index
    %c0_109 = arith.constant 0 : index
    %165 = vector.load %arg17[%c1_107, %c0_108, %c0_109] : memref<3x1x128xf32, #tpu.memory_space<vmem>>, vector<1x1x128xf32>
    %166 = vector.shape_cast %165 : vector<1x1x128xf32> to vector<1x128xf32>
    %167 = vector.broadcast %166 : vector<1x128xf32> to vector<16x128xf32>
    %168 = arith.addf %164, %167 : vector<16x128xf32>
    %c1_110 = arith.constant 1 : index
    %c0_111 = arith.constant 0 : index
    %c0_112 = arith.constant 0 : index
    %169 = vector.load %arg18[%c1_110, %c0_111, %c0_112] : memref<3x1x128xf32, #tpu.memory_space<vmem>>, vector<1x1x128xf32>
    %170 = vector.shape_cast %169 : vector<1x1x128xf32> to vector<1x128xf32>
    %171 = vector.broadcast %170 : vector<1x128xf32> to vector<16x128xf32>
    %172 = arith.mulf %168, %171 : vector<16x128xf32>
    %c1_113 = arith.constant 1 : index
    %c0_114 = arith.constant 0 : index
    %c0_115 = arith.constant 0 : index
    %173 = vector.load %arg19[%c1_113, %c0_114, %c0_115] : memref<3x1x128xf32, #tpu.memory_space<vmem>>, vector<1x1x128xf32>
    %174 = vector.shape_cast %173 : vector<1x1x128xf32> to vector<1x128xf32>
    %175 = vector.broadcast %174 : vector<1x128xf32> to vector<16x128xf32>
    %176 = arith.addf %172, %175 : vector<16x128xf32>
    %cst_116 = arith.constant 0.000000e+00 : f32
    %177 = vector.broadcast %cst_116 : f32 to vector<16x128xf32>
    %178 = arith.maximumf %176, %177 : vector<16x128xf32>
    %c1_117 = arith.constant 1 : index
    %c0_118 = arith.constant 0 : index
    %c0_119 = arith.constant 0 : index
    %179 = vector.load %arg20[%c1_117, %c0_118, %c0_119] : memref<3x128x128xbf16, #tpu.memory_space<vmem>>, vector<1x128x128xbf16>
    %180 = vector.shape_cast %179 : vector<1x128x128xbf16> to vector<128x128xbf16>
    %181 = arith.truncf %178 : vector<16x128xf32> to vector<16x128xbf16>
    %cst_120 = arith.constant dense<0.000000e+00> : vector<16x128xf32>
    %182 = tpu.matmul %181, %180, %cst_120 {dimension_numbers = #tpu.dot_dimension_numbers<[1], [0], [0], [1], [0, 0, 1, 1], [], []>} : vector<16x128xbf16>, vector<128x128xbf16>, vector<16x128xf32> -> vector<16x128xf32>
    %c1_121 = arith.constant 1 : index
    %c0_122 = arith.constant 0 : index
    %c0_123 = arith.constant 0 : index
    %183 = vector.load %arg21[%c1_121, %c0_122, %c0_123] : memref<3x1x128xf32, #tpu.memory_space<vmem>>, vector<1x1x128xf32>
    %184 = vector.shape_cast %183 : vector<1x1x128xf32> to vector<1x128xf32>
    %185 = vector.broadcast %184 : vector<1x128xf32> to vector<16x128xf32>
    %186 = arith.addf %182, %185 : vector<16x128xf32>
    %cst_124 = arith.constant 0.000000e+00 : f32
    %187 = vector.broadcast %cst_124 : f32 to vector<16x128xf32>
    %188 = arith.maximumf %186, %187 : vector<16x128xf32>
    %c1_125 = arith.constant 1 : index
    %c0_126 = arith.constant 0 : index
    %c0_127 = arith.constant 0 : index
    %189 = vector.load %arg22[%c1_125, %c0_126, %c0_127] : memref<3x1x128xf32, #tpu.memory_space<vmem>>, vector<1x1x128xf32>
    %190 = vector.shape_cast %189 : vector<1x1x128xf32> to vector<1x128xf32>
    %191 = vector.broadcast %190 : vector<1x128xf32> to vector<16x128xf32>
    %192 = arith.mulf %188, %191 : vector<16x128xf32>
    %c1_128 = arith.constant 1 : index
    %c0_129 = arith.constant 0 : index
    %c0_130 = arith.constant 0 : index
    %193 = vector.load %arg23[%c1_128, %c0_129, %c0_130] : memref<3x1x128xf32, #tpu.memory_space<vmem>>, vector<1x1x128xf32>
    %194 = vector.shape_cast %193 : vector<1x1x128xf32> to vector<1x128xf32>
    %195 = vector.broadcast %194 : vector<1x128xf32> to vector<16x128xf32>
    %196 = arith.addf %192, %195 : vector<16x128xf32>
    %197 = arith.addf %113, %196 : vector<16x128xf32>
    %198 = vector.extract_strided_slice %197 {offsets = [0, 0], sizes = [16, 96], strides = [1, 1]} : vector<16x128xf32> to vector<16x96xf32>
    %199 = tpu.concatenate %22, %198 in 1 : vector<16x32xf32>, vector<16x96xf32> -> vector<16x128xf32>
    %200 = arith.truncf %197 : vector<16x128xf32> to vector<16x128xbf16>
    %cst_131 = arith.constant dense<0.000000e+00> : vector<32x128xf32>
    %201 = tpu.matmul %12, %200, %cst_131 {dimension_numbers = #tpu.dot_dimension_numbers<[1], [0], [0], [1], [0, 0, 1, 1], [], []>} : vector<32x16xbf16>, vector<16x128xbf16>, vector<32x128xf32> -> vector<32x128xf32>
    %202 = arith.truncf %199 : vector<16x128xf32> to vector<16x128xbf16>
    %cst_132 = arith.constant dense<0.000000e+00> : vector<32x128xf32>
    %203 = tpu.matmul %6, %202, %cst_132 {dimension_numbers = #tpu.dot_dimension_numbers<[1], [0], [0], [1], [0, 0, 1, 1], [], []>} : vector<32x16xbf16>, vector<16x128xbf16>, vector<32x128xf32> -> vector<32x128xf32>
    %204 = arith.addf %201, %203 : vector<32x128xf32>
    %205 = arith.addf %204, %21 : vector<32x128xf32>
    %c2 = arith.constant 2 : index
    %c0_133 = arith.constant 0 : index
    %c0_134 = arith.constant 0 : index
    %206 = vector.load %arg8[%c2, %c0_133, %c0_134] : memref<3x128x128xbf16, #tpu.memory_space<vmem>>, vector<1x128x128xbf16>
    %207 = vector.shape_cast %206 : vector<1x128x128xbf16> to vector<128x128xbf16>
    %208 = arith.truncf %205 : vector<32x128xf32> to vector<32x128xbf16>
    %cst_135 = arith.constant dense<0.000000e+00> : vector<32x128xf32>
    %209 = tpu.matmul %208, %207, %cst_135 {dimension_numbers = #tpu.dot_dimension_numbers<[1], [0], [0], [1], [0, 0, 1, 1], [], []>} : vector<32x128xbf16>, vector<128x128xbf16>, vector<32x128xf32> -> vector<32x128xf32>
    %c2_136 = arith.constant 2 : index
    %c0_137 = arith.constant 0 : index
    %c0_138 = arith.constant 0 : index
    %210 = vector.load %arg9[%c2_136, %c0_137, %c0_138] : memref<3x1x128xf32, #tpu.memory_space<vmem>>, vector<1x1x128xf32>
    %211 = vector.shape_cast %210 : vector<1x1x128xf32> to vector<1x128xf32>
    %212 = vector.broadcast %211 : vector<1x128xf32> to vector<32x128xf32>
    %213 = arith.addf %209, %212 : vector<32x128xf32>
    %c2_139 = arith.constant 2 : index
    %c0_140 = arith.constant 0 : index
    %c0_141 = arith.constant 0 : index
    %214 = vector.load %arg10[%c2_139, %c0_140, %c0_141] : memref<3x1x128xf32, #tpu.memory_space<vmem>>, vector<1x1x128xf32>
    %215 = vector.shape_cast %214 : vector<1x1x128xf32> to vector<1x128xf32>
    %216 = vector.broadcast %215 : vector<1x128xf32> to vector<32x128xf32>
    %217 = arith.mulf %213, %216 : vector<32x128xf32>
    %c2_142 = arith.constant 2 : index
    %c0_143 = arith.constant 0 : index
    %c0_144 = arith.constant 0 : index
    %218 = vector.load %arg11[%c2_142, %c0_143, %c0_144] : memref<3x1x128xf32, #tpu.memory_space<vmem>>, vector<1x1x128xf32>
    %219 = vector.shape_cast %218 : vector<1x1x128xf32> to vector<1x128xf32>
    %220 = vector.broadcast %219 : vector<1x128xf32> to vector<32x128xf32>
    %221 = arith.addf %217, %220 : vector<32x128xf32>
    %cst_145 = arith.constant 0.000000e+00 : f32
    %222 = vector.broadcast %cst_145 : f32 to vector<32x128xf32>
    %223 = arith.maximumf %221, %222 : vector<32x128xf32>
    %c2_146 = arith.constant 2 : index
    %c0_147 = arith.constant 0 : index
    %c0_148 = arith.constant 0 : index
    %224 = vector.load %arg12[%c2_146, %c0_147, %c0_148] : memref<3x128x128xbf16, #tpu.memory_space<vmem>>, vector<1x128x128xbf16>
    %225 = vector.shape_cast %224 : vector<1x128x128xbf16> to vector<128x128xbf16>
    %226 = arith.truncf %223 : vector<32x128xf32> to vector<32x128xbf16>
    %cst_149 = arith.constant dense<0.000000e+00> : vector<32x128xf32>
    %227 = tpu.matmul %226, %225, %cst_149 {dimension_numbers = #tpu.dot_dimension_numbers<[1], [0], [0], [1], [0, 0, 1, 1], [], []>} : vector<32x128xbf16>, vector<128x128xbf16>, vector<32x128xf32> -> vector<32x128xf32>
    %c2_150 = arith.constant 2 : index
    %c0_151 = arith.constant 0 : index
    %c0_152 = arith.constant 0 : index
    %228 = vector.load %arg13[%c2_150, %c0_151, %c0_152] : memref<3x1x128xf32, #tpu.memory_space<vmem>>, vector<1x1x128xf32>
    %229 = vector.shape_cast %228 : vector<1x1x128xf32> to vector<1x128xf32>
    %230 = vector.broadcast %229 : vector<1x128xf32> to vector<32x128xf32>
    %231 = arith.addf %227, %230 : vector<32x128xf32>
    %cst_153 = arith.constant 0.000000e+00 : f32
    %232 = vector.broadcast %cst_153 : f32 to vector<32x128xf32>
    %233 = arith.maximumf %231, %232 : vector<32x128xf32>
    %c2_154 = arith.constant 2 : index
    %c0_155 = arith.constant 0 : index
    %c0_156 = arith.constant 0 : index
    %234 = vector.load %arg14[%c2_154, %c0_155, %c0_156] : memref<3x1x128xf32, #tpu.memory_space<vmem>>, vector<1x1x128xf32>
    %235 = vector.shape_cast %234 : vector<1x1x128xf32> to vector<1x128xf32>
    %236 = vector.broadcast %235 : vector<1x128xf32> to vector<32x128xf32>
    %237 = arith.mulf %233, %236 : vector<32x128xf32>
    %c2_157 = arith.constant 2 : index
    %c0_158 = arith.constant 0 : index
    %c0_159 = arith.constant 0 : index
    %238 = vector.load %arg15[%c2_157, %c0_158, %c0_159] : memref<3x1x128xf32, #tpu.memory_space<vmem>>, vector<1x1x128xf32>
    %239 = vector.shape_cast %238 : vector<1x1x128xf32> to vector<1x128xf32>
    %240 = vector.broadcast %239 : vector<1x128xf32> to vector<32x128xf32>
    %241 = arith.addf %237, %240 : vector<32x128xf32>
    %242 = arith.truncf %241 : vector<32x128xf32> to vector<32x128xbf16>
    %cst_160 = arith.constant dense<0.000000e+00> : vector<16x128xf32>
    %243 = tpu.matmul %19, %242, %cst_160 {dimension_numbers = #tpu.dot_dimension_numbers<[1], [0], [0], [1], [0, 0, 1, 1], [], []>} : vector<16x32xbf16>, vector<32x128xbf16>, vector<16x128xf32> -> vector<16x128xf32>
    %244 = arith.addf %197, %243 : vector<16x128xf32>
    %c2_161 = arith.constant 2 : index
    %c0_162 = arith.constant 0 : index
    %c0_163 = arith.constant 0 : index
    %245 = vector.load %arg16[%c2_161, %c0_162, %c0_163] : memref<3x128x128xbf16, #tpu.memory_space<vmem>>, vector<1x128x128xbf16>
    %246 = vector.shape_cast %245 : vector<1x128x128xbf16> to vector<128x128xbf16>
    %247 = arith.truncf %244 : vector<16x128xf32> to vector<16x128xbf16>
    %cst_164 = arith.constant dense<0.000000e+00> : vector<16x128xf32>
    %248 = tpu.matmul %247, %246, %cst_164 {dimension_numbers = #tpu.dot_dimension_numbers<[1], [0], [0], [1], [0, 0, 1, 1], [], []>} : vector<16x128xbf16>, vector<128x128xbf16>, vector<16x128xf32> -> vector<16x128xf32>
    %c2_165 = arith.constant 2 : index
    %c0_166 = arith.constant 0 : index
    %c0_167 = arith.constant 0 : index
    %249 = vector.load %arg17[%c2_165, %c0_166, %c0_167] : memref<3x1x128xf32, #tpu.memory_space<vmem>>, vector<1x1x128xf32>
    %250 = vector.shape_cast %249 : vector<1x1x128xf32> to vector<1x128xf32>
    %251 = vector.broadcast %250 : vector<1x128xf32> to vector<16x128xf32>
    %252 = arith.addf %248, %251 : vector<16x128xf32>
    %c2_168 = arith.constant 2 : index
    %c0_169 = arith.constant 0 : index
    %c0_170 = arith.constant 0 : index
    %253 = vector.load %arg18[%c2_168, %c0_169, %c0_170] : memref<3x1x128xf32, #tpu.memory_space<vmem>>, vector<1x1x128xf32>
    %254 = vector.shape_cast %253 : vector<1x1x128xf32> to vector<1x128xf32>
    %255 = vector.broadcast %254 : vector<1x128xf32> to vector<16x128xf32>
    %256 = arith.mulf %252, %255 : vector<16x128xf32>
    %c2_171 = arith.constant 2 : index
    %c0_172 = arith.constant 0 : index
    %c0_173 = arith.constant 0 : index
    %257 = vector.load %arg19[%c2_171, %c0_172, %c0_173] : memref<3x1x128xf32, #tpu.memory_space<vmem>>, vector<1x1x128xf32>
    %258 = vector.shape_cast %257 : vector<1x1x128xf32> to vector<1x128xf32>
    %259 = vector.broadcast %258 : vector<1x128xf32> to vector<16x128xf32>
    %260 = arith.addf %256, %259 : vector<16x128xf32>
    %cst_174 = arith.constant 0.000000e+00 : f32
    %261 = vector.broadcast %cst_174 : f32 to vector<16x128xf32>
    %262 = arith.maximumf %260, %261 : vector<16x128xf32>
    %c2_175 = arith.constant 2 : index
    %c0_176 = arith.constant 0 : index
    %c0_177 = arith.constant 0 : index
    %263 = vector.load %arg20[%c2_175, %c0_176, %c0_177] : memref<3x128x128xbf16, #tpu.memory_space<vmem>>, vector<1x128x128xbf16>
    %264 = vector.shape_cast %263 : vector<1x128x128xbf16> to vector<128x128xbf16>
    %265 = arith.truncf %262 : vector<16x128xf32> to vector<16x128xbf16>
    %cst_178 = arith.constant dense<0.000000e+00> : vector<16x128xf32>
    %266 = tpu.matmul %265, %264, %cst_178 {dimension_numbers = #tpu.dot_dimension_numbers<[1], [0], [0], [1], [0, 0, 1, 1], [], []>} : vector<16x128xbf16>, vector<128x128xbf16>, vector<16x128xf32> -> vector<16x128xf32>
    %c2_179 = arith.constant 2 : index
    %c0_180 = arith.constant 0 : index
    %c0_181 = arith.constant 0 : index
    %267 = vector.load %arg21[%c2_179, %c0_180, %c0_181] : memref<3x1x128xf32, #tpu.memory_space<vmem>>, vector<1x1x128xf32>
    %268 = vector.shape_cast %267 : vector<1x1x128xf32> to vector<1x128xf32>
    %269 = vector.broadcast %268 : vector<1x128xf32> to vector<16x128xf32>
    %270 = arith.addf %266, %269 : vector<16x128xf32>
    %cst_182 = arith.constant 0.000000e+00 : f32
    %271 = vector.broadcast %cst_182 : f32 to vector<16x128xf32>
    %272 = arith.maximumf %270, %271 : vector<16x128xf32>
    %c2_183 = arith.constant 2 : index
    %c0_184 = arith.constant 0 : index
    %c0_185 = arith.constant 0 : index
    %273 = vector.load %arg22[%c2_183, %c0_184, %c0_185] : memref<3x1x128xf32, #tpu.memory_space<vmem>>, vector<1x1x128xf32>
    %274 = vector.shape_cast %273 : vector<1x1x128xf32> to vector<1x128xf32>
    %275 = vector.broadcast %274 : vector<1x128xf32> to vector<16x128xf32>
    %276 = arith.mulf %272, %275 : vector<16x128xf32>
    %c2_186 = arith.constant 2 : index
    %c0_187 = arith.constant 0 : index
    %c0_188 = arith.constant 0 : index
    %277 = vector.load %arg23[%c2_186, %c0_187, %c0_188] : memref<3x1x128xf32, #tpu.memory_space<vmem>>, vector<1x1x128xf32>
    %278 = vector.shape_cast %277 : vector<1x1x128xf32> to vector<1x128xf32>
    %279 = vector.broadcast %278 : vector<1x128xf32> to vector<16x128xf32>
    %280 = arith.addf %276, %279 : vector<16x128xf32>
    %281 = arith.addf %197, %280 : vector<16x128xf32>
    %282 = tpu.iota {dimensions = array<i32: 1>} : vector<1x128xi32>
    %c32_i32 = arith.constant 32 : i32
    %283 = vector.broadcast %c32_i32 : i32 to vector<1x128xi32>
    %284 = arith.cmpi slt, %282, %283 : vector<1x128xi32>
    %285 = arith.extui %284 : vector<1x128xi1> to vector<1x128xi32>
    %286 = arith.sitofp %285 : vector<1x128xi32> to vector<1x128xf32>
    %287 = vector.broadcast %286 : vector<1x128xf32> to vector<16x128xf32>
    %288 = arith.mulf %281, %287 : vector<16x128xf32>
    %cst_189 = arith.constant dense<0.000000e+00> : vector<16xf32>
    %289 = vector.multi_reduction <add>, %288, %cst_189 [1] : vector<16x128xf32> to vector<16xf32>
    %290 = vector.shape_cast %289 : vector<16xf32> to vector<16x1xf32>
    %cst_190 = arith.constant 3.125000e-02 : f32
    %291 = vector.broadcast %cst_190 : f32 to vector<16x1xf32>
    %292 = arith.mulf %290, %291 : vector<16x1xf32>
    %293 = vector.broadcast %292 : vector<16x1xf32> to vector<16x128xf32>
    %294 = arith.subf %281, %293 : vector<16x128xf32>
    %295 = vector.broadcast %286 : vector<1x128xf32> to vector<16x128xf32>
    %296 = arith.mulf %294, %295 : vector<16x128xf32>
    %297 = arith.mulf %296, %296 : vector<16x128xf32>
    %cst_191 = arith.constant dense<0.000000e+00> : vector<16xf32>
    %298 = vector.multi_reduction <add>, %297, %cst_191 [1] : vector<16x128xf32> to vector<16xf32>
    %299 = vector.shape_cast %298 : vector<16xf32> to vector<16x1xf32>
    %cst_192 = arith.constant 3.125000e-02 : f32
    %300 = vector.broadcast %cst_192 : f32 to vector<16x1xf32>
    %301 = arith.mulf %299, %300 : vector<16x1xf32>
    %cst_193 = arith.constant 9.99999974E-6 : f32
    %302 = vector.broadcast %cst_193 : f32 to vector<16x1xf32>
    %303 = arith.addf %301, %302 : vector<16x1xf32>
    %304 = math.rsqrt %303 : vector<16x1xf32>
    %305 = vector.broadcast %304 : vector<16x1xf32> to vector<16x128xf32>
    %306 = arith.mulf %296, %305 : vector<16x128xf32>
    %c0_194 = arith.constant 0 : index
    %c0_195 = arith.constant 0 : index
    %307 = vector.load %arg5[%c0_194, %c0_195] : memref<8x16xf32, #tpu.memory_space<vmem>>, vector<8x16xf32>
    %308 = arith.truncf %307 : vector<8x16xf32> to vector<8x16xbf16>
    %309 = arith.truncf %306 : vector<16x128xf32> to vector<16x128xbf16>
    %cst_196 = arith.constant dense<0.000000e+00> : vector<8x128xf32>
    %310 = tpu.matmul %308, %309, %cst_196 {dimension_numbers = #tpu.dot_dimension_numbers<[1], [0], [0], [1], [0, 0, 1, 1], [], []>} : vector<8x16xbf16>, vector<16x128xbf16>, vector<8x128xf32> -> vector<8x128xf32>
    %c0_197 = arith.constant 0 : index
    %c0_198 = arith.constant 0 : index
    %311 = vector.load %arg24[%c0_197, %c0_198] : memref<128x128xbf16, #tpu.memory_space<vmem>>, vector<128x128xbf16>
    %312 = arith.truncf %310 : vector<8x128xf32> to vector<8x128xbf16>
    %cst_199 = arith.constant dense<0.000000e+00> : vector<8x128xf32>
    %313 = tpu.matmul %312, %311, %cst_199 {dimension_numbers = #tpu.dot_dimension_numbers<[1], [0], [0], [1], [0, 0, 1, 1], [], []>} : vector<8x128xbf16>, vector<128x128xbf16>, vector<8x128xf32> -> vector<8x128xf32>
    %c0_200 = arith.constant 0 : index
    %c0_201 = arith.constant 0 : index
    %314 = vector.load %arg25[%c0_200, %c0_201] : memref<1x128xf32, #tpu.memory_space<vmem>>, vector<1x128xf32>
    %315 = vector.broadcast %314 : vector<1x128xf32> to vector<8x128xf32>
    %316 = arith.addf %313, %315 : vector<8x128xf32>
    %c0_202 = arith.constant 0 : index
    %c0_203 = arith.constant 0 : index
    %317 = vector.load %arg26[%c0_202, %c0_203] : memref<8x128xf32, #tpu.memory_space<vmem>>, vector<8x128xf32>
    tpu.vector_store %arg26[%c0_202, %c0_203], %316 {strides = array<i32>} : memref<8x128xf32, #tpu.memory_space<vmem>>, vector<8x128xf32>,
    return
  }
}

</mosaic_0001>

<bundles_post_ra>
// kernel: tpu_custom_call.1
= control target key start
LH: loop header
LB: loop body
LE: loop exit
PB: predicated region body
PF: predicated region fallthrough
CT: control target
= control target key end

     0   :  { %s4991_s0 = inlined_call_operand.hbm [shape: f32[16,128], index: 0, kind: input, shape index: {}]   ;;  %s4992_s1 = inlined_call_operand.vmem [shape: s32[32,1], index: 1, kind: input, shape index: {}]   ;;  %s4993_s2 = inlined_call_operand.vmem [shape: s32[32,1], index: 2, kind: input, shape index: {}]   ;;  %s4994_s3 = inlined_call_operand.hbm [shape: s32[1,32], index: 3, kind: input, shape index: {}]   ;;  %s4995_s4 = inlined_call_operand.hbm [shape: bf16[32,128], index: 4, kind: input, shape index: {}]   ;;  %s4996_s5 = inlined_call_operand.hbm [shape: f32[8,16], index: 5, kind: input, shape index: {}]   ;;  %s4997_s6 = inlined_call_operand.vmem [shape: bf16[128,128], index: 6, kind: input, shape index: {}]   ;;  %s4998_s7 = inlined_call_operand.hbm [shape: f32[1,128], index: 7, kind: input, shape index: {}]   ;;  %s4999_s8 = inlined_call_operand.hbm [shape: bf16[3,128,128], index: 8, kind: input, shape index: {}]   ;;  %s5000_s9 = inlined_call_operand.hbm [shape: f32[3,1,128], index: 9, kind: input, shape index: {}]   ;;  %s5001_s10 = inlined_call_operand.hbm [shape: f32[3,1,128], index: 10, kind: input, shape index: {}]   ;;  %s5002_s11 = inlined_call_operand.hbm [shape: f32[3,1,128], index: 11, kind: input, shape index: {}]   ;;  %s5003_s12 = inlined_call_operand.hbm [shape: bf16[3,128,128], index: 12, kind: input, shape index: {}]   ;;  %s5004_s13 = inlined_call_operand.hbm [shape: f32[3,1,128], index: 13, kind: input, shape index: {}]   ;;  %s5005_s14 = inlined_call_operand.hbm [shape: f32[3,1,128], index: 14, kind: input, shape index: {}]   ;;  %s5006_s15 = inlined_call_operand.hbm [shape: f32[3,1,128], index: 15, kind: input, shape index: {}]   ;;  %s5007_s16 = inlined_call_operand.hbm [shape: bf16[3,128,128], index: 16, kind: input, shape index: {}]   ;;  %s5008_s17 = inlined_call_operand.hbm [shape: f32[3,1,128], index: 17, kind: input, shape index: {}]   ;;  %s5009_s18 = inlined_call_operand.vmem [shape: f32[3,1,128], index: 18, kind: input, shape index: {}]   ;;  %s5010_s19 = inlined_call_operand.vmem [shape: f32[3,1,128], index: 19, kind: input, shape index: {}]   ;;  %s5011_s20 = inlined_call_operand.hbm [shape: bf16[3,128,128], index: 20, kind: input, shape index: {}]   ;;  %s5012_s21 = inlined_call_operand.vmem [shape: f32[3,1,128], index: 21, kind: input, shape index: {}]   ;;  %s5013_s22 = inlined_call_operand.vmem [shape: f32[3,1,128], index: 22, kind: input, shape index: {}]   ;;  %s5014_s23 = inlined_call_operand.vmem [shape: f32[3,1,128], index: 23, kind: input, shape index: {}]   ;;  %s5015_s24 = inlined_call_operand.vmem [shape: bf16[128,128], index: 24, kind: input, shape index: {}]   ;;  %s5016_s25 = inlined_call_operand.vmem [shape: f32[1,128], index: 25, kind: input, shape index: {}]   ;;  %s5017_s26 = inlined_call_operand.hbm [shape: f32[8,128], index: 26, kind: output, shape index: {}]  }
   0x1   :  { %5033 = sst [smem:[#allocation39_spill]] %s4991_s0 }
   0x2   :  { %5034 = sst [smem:[#allocation40_spill]] %s4992_s1 }
   0x3   :  { %5035 = sst [smem:[#allocation41_spill]] %s4993_s2 }
   0x4   :  { %5036 = sst [smem:[#allocation42_spill]] %s4994_s3 }
   0x5   :  { %5037 = sst [smem:[#allocation43_spill]] %s4995_s4 }
   0x6   :  { %5038 = sst [smem:[#allocation44_spill]] %s4996_s5 }
   0x7   :  { %5039 = sst [smem:[#allocation45_spill]] %s4997_s6 }
   0x8   :  { %5040 = sst [smem:[#allocation46_spill]] %s4998_s7 }
   0x9   :  { %5041 = sst [smem:[#allocation47_spill]] %s4999_s8 }
   0xa   :  { %5042 = sst [smem:[#allocation48_spill]] %s5000_s9 }
   0xb   :  { %5043 = sst [smem:[#allocation49_spill]] %s5001_s10 }
   0xc   :  { %5044 = sst [smem:[#allocation50_spill]] %s5015_s24 }
   0xd   :  { %5045 = sst [smem:[#allocation51_spill]] %s5016_s25 }
   0xe   :  { %5046 = sst [smem:[#allocation52_spill]] %s5017_s26 }
   0xf   :  { %31 = vsyncpa [#allocation3], 0 }
  0x10   :  { %32 = vsyncpa [#allocation6], 0 }
  0x11   :  { %33 = vsyncpa [#allocation9], 0 }
  0x12   :  { %34 = vsyncpa [#allocation12], 0 }
  0x13   :  { %35 = vsyncpa [#allocation15], 0 }
  0x14   :  { %36 = vsyncpa [#allocation18], 0 }
  0x15   :  { %37 = vsyncpa [#allocation21], 0 }
  0x16   :  { %38 = vsyncpa [#allocation24], 0 }
  0x17   :  { %39 = vsyncpa [#allocation27], 0 }
  0x18   :  { %40 = vsyncpa [#allocation4], 0  ;;  %s4210_s27 = smov [#allocation5]   ;;  %s4211_s7 = smov [#allocation8]  }
  0x19   :  { %s63_s3 = sshll.u32 %s4210_s27, 4  ;;  %s85_s28 = sshll.u32 %s4211_s7, 4  ;;  %s64_s3 = int_to_ptr.vmem [resolvable:$true] %s63_s3  ;;  %s86_s28 = int_to_ptr.vmem [resolvable:$true] %s85_s28 }
  0x1a   :  { %s5047_s29 = sld [smem:[#allocation42_spill]] }
  0x20   :  { %s3816_s0 = scalar_lea.hbm %s5047_s29, 16 }
  0x21   :  { %p3817_p0 = scmp.ne.s32.totalorder %s5047_s29, %s3816_s0  ;;  %p3820_p1 = scmp.lt.u32.totalorder %s3816_s0, %s5047_s29 }
  0x23   :  { %p3822_p2 = pnand %p3820_p1, %p3817_p0 }
  0x25   :  { %3825 = shalt.err (!%p3822_p2)
}
  0x26   :  { %s3826_s10 = scalar_lea.vmem %s64_s3, 16  ;;  %s3830_s6 = scalar_lea.vmem %s64_s3, 32 }
  0x27   :  { %p3827_p3 = scmp.ne.s32.totalorder %s64_s3, %s3826_s10  ;;  %p3831_p4 = scmp.lt.s32.totalorder %s64_s3, %s64_s3 }
  0x28   :  { %p3832_p5 = scmp.lt.s32.totalorder %s3830_s6, %s3826_s10 }
  0x2a   :  { %p3833_p6 = por %p3832_p5, %p3831_p4 }
  0x2c   :  { %p3834_p7 = pnand %p3833_p6, %p3827_p3 }
  0x2e   :  { %3837 = shalt.err (!%p3834_p7)
}
  0x2f   :  { %66 = dma.hbm_to_vmem [thread:$0]  %s5047_s29, 16, %s64_s3, [#allocation6]  }
  0x30   :  { %s5048_s4 = sld [smem:[#allocation44_spill]] }
  0x36   :  { %s3838_s9 = scalar_lea.hbm %s5048_s4, 128 }
  0x37   :  { %p3839_p8 = scmp.ne.s32.totalorder %s5048_s4, %s3838_s9  ;;  %p3842_p9 = scmp.lt.u32.totalorder %s3838_s9, %s5048_s4 }
  0x39   :  { %p3844_p10 = pnand %p3842_p9, %p3839_p8 }
  0x3b   :  { %3847 = shalt.err (!%p3844_p10)
}
  0x3c   :  { %s3848_s10 = scalar_lea.vmem %s86_s28, 128  ;;  %p3853_p12 = scmp.lt.s32.totalorder %s86_s28, %s86_s28 }
  0x3d   :  { %p3849_p11 = scmp.ne.s32.totalorder %s86_s28, %s3848_s10  ;;  %p3854_p13 = scmp.lt.s32.totalorder %s3848_s10, %s3848_s10 }
  0x3f   :  { %p3855_p0 = por %p3854_p13, %p3853_p12 }
  0x41   :  { %p3856_p1 = pnand %p3855_p0, %p3849_p11 }
  0x43   :  { %3859 = shalt.err (!%p3856_p1)
}
  0x44   :  { %88 = dma.hbm_to_vmem [thread:$0]  %s5048_s4, 128, %s86_s28, [#allocation9]  }
  0x45   :  { %s4212_s6 = smov [#allocation11]   ;;  %s5049_s8 = sld [smem:[#allocation47_spill]] }
  0x46   :  { %s106_s1 = sshll.u32 %s4212_s6, 4  ;;  %s107_s1 = int_to_ptr.vmem [resolvable:$true] %s106_s1 }
  0x4b   :  { %s3860_s9 = scalar_lea.hbm %s5049_s8, 3072 }
  0x4c   :  { %p3861_p2 = scmp.ne.s32.totalorder %s5049_s8, %s3860_s9  ;;  %p3864_p3 = scmp.lt.u32.totalorder %s3860_s9, %s5049_s8 }
  0x4e   :  { %p3866_p4 = pnand %p3864_p3, %p3861_p2 }
  0x50   :  { %3869 = shalt.err (!%p3866_p4)
}
  0x51   :  { %s3870_s10 = scalar_lea.vmem %s107_s1, 3072  ;;  %p3875_p6 = scmp.lt.s32.totalorder %s107_s1, %s107_s1 }
  0x52   :  { %p3871_p5 = scmp.ne.s32.totalorder %s107_s1, %s3870_s10  ;;  %p3876_p7 = scmp.lt.s32.totalorder %s3870_s10, %s3870_s10 }
  0x54   :  { %p3877_p8 = por %p3876_p7, %p3875_p6 }
  0x56   :  { %p3878_p9 = pnand %p3877_p8, %p3871_p5 }
  0x58   :  { %3881 = shalt.err (!%p3878_p9)
}
  0x59   :  { %s4213_s28 = smov 64   ;;  %s4214_s4 = smov 4  }
  0x5a   :  { %112 = dma.hbm_to_vmem [thread:$0]  %s5049_s8, 3072, %s107_s1, [#allocation12], %s4213_s28, %s4213_s28, %s4214_s4  }
  0x5b   :  { %s4215_s6 = smov [#allocation14]   ;;  %s4216_s7 = smov [#allocation17]  }
  0x5c   :  { %s130_s27 = sshll.u32 %s4215_s6, 4  ;;  %s154_s9 = sshll.u32 %s4216_s7, 4  ;;  %s131_s27 = int_to_ptr.vmem [resolvable:$true] %s130_s27  ;;  %s155_s9 = int_to_ptr.vmem [resolvable:$true] %s154_s9 }
  0x5d   :  { %s5050_s2 = sld [smem:[#allocation49_spill]] }
  0x63   :  { %s3882_s5 = scalar_lea.hbm %s5050_s2, 48 }
  0x64   :  { %p3883_p10 = scmp.ne.s32.totalorder %s5050_s2, %s3882_s5  ;;  %p3886_p11 = scmp.lt.u32.totalorder %s3882_s5, %s5050_s2 }
  0x66   :  { %p3888_p12 = pnand %p3886_p11, %p3883_p10 }
  0x68   :  { %3891 = shalt.err (!%p3888_p12)
}
  0x69   :  { %s3892_s1 = scalar_lea.vmem %s131_s27, 48  ;;  %s3896_s8 = scalar_lea.vmem %s131_s27, 64 }
  0x6a   :  { %p3893_p13 = scmp.ne.s32.totalorder %s131_s27, %s3892_s1  ;;  %p3897_p0 = scmp.lt.s32.totalorder %s131_s27, %s131_s27 }
  0x6b   :  { %p3898_p1 = scmp.lt.s32.totalorder %s3896_s8, %s3892_s1 }
  0x6d   :  { %p3899_p2 = por %p3898_p1, %p3897_p0 }
  0x6f   :  { %p3900_p3 = pnand %p3899_p2, %p3893_p13 }
  0x71   :  { %3903 = shalt.err (!%p3900_p3)
}
  0x72   :  { %s5031_s3 = smov 16   ;;  %s4218_s29 = smov 1  }
  0x73   :  { %136 = dma.hbm_to_vmem [thread:$0]  %s5050_s2, 48, %s131_s27, [#allocation15], %s5031_s3, %s5031_s3, %s4218_s29  }
  0x74   :  { %s3904_s7 = scalar_lea.hbm %s5003_s12, 3072 }
  0x75   :  { %p3905_p4 = scmp.ne.s32.totalorder %s5003_s12, %s3904_s7  ;;  %p3908_p5 = scmp.lt.u32.totalorder %s3904_s7, %s5003_s12 }
  0x77   :  { %p3910_p6 = pnand %p3908_p5, %p3905_p4 }
  0x79   :  { %3913 = shalt.err (!%p3910_p6)
}
  0x7a   :  { %s3914_s1 = scalar_lea.vmem %s155_s9, 3072  ;;  %p3919_p8 = scmp.lt.s32.totalorder %s155_s9, %s155_s9 }
  0x7b   :  { %p3915_p7 = scmp.ne.s32.totalorder %s155_s9, %s3914_s1  ;;  %p3920_p9 = scmp.lt.s32.totalorder %s3914_s1, %s3914_s1 }
  0x7d   :  { %p3921_p10 = por %p3920_p9, %p3919_p8 }
  0x7f   :  { %p3922_p11 = pnand %p3921_p10, %p3915_p7 }
  0x81   :  { %3925 = shalt.err (!%p3922_p11)
}
  0x82   :  { %160 = dma.hbm_to_vmem [thread:$0]  %s5003_s12, 3072, %s155_s9, [#allocation18], %s4213_s28, %s4213_s28, %s4214_s4  }
  0x83   :  { %s4219_s8 = smov [#allocation20]   ;;  %s4220_s6 = smov [#allocation23]  }
  0x84   :  { %s178_s26 = sshll.u32 %s4219_s8, 4  ;;  %s202_s24 = sshll.u32 %s4220_s6, 4  ;;  %s179_s26 = int_to_ptr.vmem [resolvable:$true] %s178_s26  ;;  %s203_s24 = int_to_ptr.vmem [resolvable:$true] %s202_s24 }
  0x85   :  { %s3926_s30 = scalar_lea.hbm %s5005_s14, 48 }
  0x86   :  { %p3927_p12 = scmp.ne.s32.totalorder %s5005_s14, %s3926_s30  ;;  %p3930_p13 = scmp.lt.u32.totalorder %s3926_s30, %s5005_s14 }
  0x88   :  { %p3932_p0 = pnand %p3930_p13, %p3927_p12 }
  0x8a   :  { %3935 = shalt.err (!%p3932_p0)
}
  0x8b   :  { %s3936_s12 = scalar_lea.vmem %s179_s26, 48  ;;  %s3940_s9 = scalar_lea.vmem %s179_s26, 64 }
  0x8c   :  { %p3937_p1 = scmp.ne.s32.totalorder %s179_s26, %s3936_s12  ;;  %p3941_p2 = scmp.lt.s32.totalorder %s179_s26, %s179_s26 }
  0x8d   :  { %p3942_p3 = scmp.lt.s32.totalorder %s3940_s9, %s3936_s12 }
  0x8f   :  { %p3943_p4 = por %p3942_p3, %p3941_p2 }
  0x91   :  { %p3944_p5 = pnand %p3943_p4, %p3937_p1 }
  0x93   :  { %3947 = shalt.err (!%p3944_p5)
}
  0x94   :  { %184 = dma.hbm_to_vmem [thread:$0]  %s5005_s14, 48, %s179_s26, [#allocation21], %s5031_s3, %s5031_s3, %s4218_s29  }
  0x95   :  { %s3948_s25 = scalar_lea.hbm %s5007_s16, 3072 }
  0x96   :  { %p3949_p6 = scmp.ne.s32.totalorder %s5007_s16, %s3948_s25  ;;  %p3952_p7 = scmp.lt.u32.totalorder %s3948_s25, %s5007_s16 }
  0x98   :  { %p3954_p8 = pnand %p3952_p7, %p3949_p6 }
  0x9a   :  { %3957 = shalt.err (!%p3954_p8)
}
  0x9b   :  { %s3958_s10 = scalar_lea.vmem %s203_s24, 3072  ;;  %p3963_p10 = scmp.lt.s32.totalorder %s203_s24, %s203_s24 }
  0x9c   :  { %p3959_p9 = scmp.ne.s32.totalorder %s203_s24, %s3958_s10  ;;  %p3964_p11 = scmp.lt.s32.totalorder %s3958_s10, %s3958_s10 }
  0x9e   :  { %p3965_p12 = por %p3964_p11, %p3963_p10 }
  0xa0   :  { %p3966_p13 = pnand %p3965_p12, %p3959_p9 }
  0xa2   :  { %3969 = shalt.err (!%p3966_p13)
}
  0xa3   :  { %208 = dma.hbm_to_vmem [thread:$0]  %s5007_s16, 3072, %s203_s24, [#allocation24], %s4213_s28, %s4213_s28, %s4214_s4  }
  0xa4   :  { %s4221_s1 = smov [#allocation2]   ;;  %s5051_s2 = sld [smem:[#allocation39_spill]] }
  0xa5   :  { %s46_s12 = sshll.u32 %s4221_s1, 4  ;;  %s47_s12 = int_to_ptr.vmem [resolvable:$true] %s46_s12 }
  0xaa   :  { %s3970_s8 = scalar_lea.hbm %s5051_s2, 256 }
  0xab   :  { %p3971_p0 = scmp.ne.s32.totalorder %s5051_s2, %s3970_s8  ;;  %p3974_p1 = scmp.lt.u32.totalorder %s3970_s8, %s5051_s2 }
  0xad   :  { %p3976_p2 = pnand %p3974_p1, %p3971_p0 }
  0xaf   :  { %3979 = shalt.err (!%p3976_p2)
}
  0xb0   :  { %s3980_s0 = scalar_lea.vmem %s47_s12, 256  ;;  %p3985_p4 = scmp.lt.s32.totalorder %s47_s12, %s47_s12 }
  0xb1   :  { %p3981_p3 = scmp.ne.s32.totalorder %s47_s12, %s3980_s0  ;;  %p3986_p5 = scmp.lt.s32.totalorder %s3980_s0, %s3980_s0 }
  0xb3   :  { %p3987_p6 = por %p3986_p5, %p3985_p4 }
  0xb5   :  { %p3988_p7 = pnand %p3987_p6, %p3981_p3 }
  0xb7   :  { %3991 = shalt.err (!%p3988_p7)
}
  0xb8   :  { %s4222_s16 = smov 128   ;;  %s4223_s24 = smov 8  }
  0xb9   :  { %52 = dma.hbm_to_vmem [thread:$0]  %s5051_s2, 256, %s47_s12, [#allocation3], %s4222_s16, %s4222_s16, %s4223_s24  }
  0xba   :  { %s4224_s14 = smov [#allocation7]   ;;  %s4225_s1 = smov [#allocation10]  }
  0xbb   :  { %s72_s26 = sshll.u32 %s4224_s14, 4  ;;  %s97_s9 = sshll.u32 %s4225_s1, 4  ;;  %s73_s26 = int_to_ptr.vmem [resolvable:$true] %s72_s26  ;;  %s98_s9 = int_to_ptr.vmem [resolvable:$true] %s97_s9 }
  0xbc   :  { %s5052_s6 = sld [smem:[#allocation43_spill]] }
  0xc2   :  { %s3992_s25 = scalar_lea.hbm %s5052_s6, 256 }
  0xc3   :  { %p3993_p8 = scmp.ne.s32.totalorder %s5052_s6, %s3992_s25  ;;  %p3996_p9 = scmp.lt.u32.totalorder %s3992_s25, %s5052_s6 }
  0xc5   :  { %p3998_p10 = pnand %p3996_p9, %p3993_p8 }
  0xc7   :  { %4001 = shalt.err (!%p3998_p10)
}
  0xc8   :  { %s4002_s12 = scalar_lea.vmem %s73_s26, 256  ;;  %p4007_p12 = scmp.lt.s32.totalorder %s73_s26, %s73_s26 }
  0xc9   :  { %p4003_p11 = scmp.ne.s32.totalorder %s73_s26, %s4002_s12  ;;  %p4008_p13 = scmp.lt.s32.totalorder %s4002_s12, %s4002_s12 }
  0xcb   :  { %p4009_p0 = por %p4008_p13, %p4007_p12 }
  0xcd   :  { %p4010_p1 = pnand %p4009_p0, %p4003_p11 }
  0xcf   :  { %4013 = shalt.err (!%p4010_p1)
}
  0xd0   :  { %78 = dma.hbm_to_vmem [thread:$0]  %s5052_s6, 256, %s73_s26, [#allocation6], %s4213_s28, %s4213_s28, %s4214_s4  }
  0xd1   :  { %s5053_s3 = sld [smem:[#allocation46_spill]] }
  0xd7   :  { %s4014_s10 = scalar_lea.hbm %s5053_s3, 16 }
  0xd8   :  { %p4015_p2 = scmp.ne.s32.totalorder %s5053_s3, %s4014_s10  ;;  %p4018_p3 = scmp.lt.u32.totalorder %s4014_s10, %s5053_s3 }
  0xda   :  { %p4020_p4 = pnand %p4018_p3, %p4015_p2 }
  0xdc   :  { %4023 = shalt.err (!%p4020_p4)
}
  0xdd   :  { %s4024_s25 = scalar_lea.vmem %s98_s9, 16  ;;  %s4028_s7 = scalar_lea.vmem %s98_s9, 32 }
  0xde   :  { %p4025_p5 = scmp.ne.s32.totalorder %s98_s9, %s4024_s25  ;;  %p4029_p6 = scmp.lt.s32.totalorder %s98_s9, %s98_s9 }
  0xdf   :  { %p4030_p7 = scmp.lt.s32.totalorder %s4028_s7, %s4024_s25 }
  0xe1   :  { %p4031_p8 = por %p4030_p7, %p4029_p6 }
  0xe3   :  { %p4032_p9 = pnand %p4031_p8, %p4025_p5 }
  0xe5   :  { %4035 = shalt.err (!%p4032_p9)
}
  0xe6   :  { %100 = dma.hbm_to_vmem [thread:$0]  %s5053_s3, 16, %s98_s9, [#allocation9]  }
  0xe7   :  { %s4226_s30 = smov [#allocation13]   ;;  %s4227_s12 = smov [#allocation16]  }
  0xe8   :  { %s118_s0 = sshll.u32 %s4226_s30, 4  ;;  %s142_s2 = sshll.u32 %s4227_s12, 4  ;;  %s119_s0 = int_to_ptr.vmem [resolvable:$true] %s118_s0  ;;  %s4510_s2 = int_to_ptr.vmem [resolvable:$true] %s142_s2 }
  0xe9   :  { %s5054_s5 = sld [smem:[#allocation48_spill]] }
  0xef   :  { %s4036_s10 = scalar_lea.hbm %s5054_s5, 48 }
  0xf0   :  { %p4037_p10 = scmp.ne.s32.totalorder %s5054_s5, %s4036_s10  ;;  %p4040_p11 = scmp.lt.u32.totalorder %s4036_s10, %s5054_s5 }
  0xf2   :  { %p4042_p12 = pnand %p4040_p11, %p4037_p10 }
  0xf4   :  { %4045 = shalt.err (!%p4042_p12)
}
  0xf5   :  { %s4046_s9 = scalar_lea.vmem %s119_s0, 48  ;;  %s4050_s3 = scalar_lea.vmem %s119_s0, 64 }
  0xf6   :  { %p4047_p13 = scmp.ne.s32.totalorder %s119_s0, %s4046_s9  ;;  %p4051_p0 = scmp.lt.s32.totalorder %s119_s0, %s119_s0 }
  0xf7   :  { %p4052_p1 = scmp.lt.s32.totalorder %s4050_s3, %s4046_s9 }
  0xf9   :  { %p4053_p2 = por %p4052_p1, %p4051_p0 }
  0xfb   :  { %p4054_p3 = pnand %p4053_p2, %p4047_p13 }
  0xfd   :  { %4057 = shalt.err (!%p4054_p3)
}
  0xfe   :  { %s5055_s25 = smov 16   ;;  %s4058_s12 = scalar_lea.hbm %s5002_s11, 48 }
  0xff   :  { %124 = dma.hbm_to_vmem [thread:$0]  %s5054_s5, 48, %s119_s0, [#allocation12], %s5055_s25, %s5055_s25, %s4218_s29  }
 0x100   :  { %p4059_p4 = scmp.ne.s32.totalorder %s5002_s11, %s4058_s12  ;;  %p4062_p5 = scmp.lt.u32.totalorder %s4058_s12, %s5002_s11 }
 0x102   :  { %p4064_p6 = pnand %p4062_p5, %p4059_p4 }
 0x104   :  { %4067 = shalt.err (!%p4064_p6)
}
 0x105   :  { %s4068_s1 = scalar_lea.vmem %s4510_s2, 48  ;;  %s4072_s0 = scalar_lea.vmem %s4510_s2, 64 }
 0x106   :  { %p4069_p7 = scmp.ne.s32.totalorder %s4510_s2, %s4068_s1  ;;  %p4073_p8 = scmp.lt.s32.totalorder %s4510_s2, %s4510_s2 }
 0x107   :  { %p4074_p9 = scmp.lt.s32.totalorder %s4072_s0, %s4068_s1 }
 0x109   :  { %p4075_p10 = por %p4074_p9, %p4073_p8 }
 0x10b   :  { %p4076_p11 = pnand %p4075_p10, %p4069_p7 }
 0x10d   :  { %4079 = shalt.err (!%p4076_p11)
}
 0x10e   :  { %148 = dma.hbm_to_vmem [thread:$0]  %s5002_s11, 48, %s4510_s2, [#allocation15], %s5055_s25, %s5055_s25, %s4218_s29  }
 0x10f   :  { %s4228_s8 = smov [#allocation19]   ;;  %s4229_s3 = smov [#allocation22]  }
 0x110   :  { %s166_s9 = sshll.u32 %s4228_s8, 4  ;;  %s190_s7 = sshll.u32 %s4229_s3, 4  ;;  %s167_s9 = int_to_ptr.vmem [resolvable:$true] %s166_s9  ;;  %s4548_s7 = int_to_ptr.vmem [resolvable:$true] %s190_s7 }
 0x111   :  { %s4080_s30 = scalar_lea.hbm %s5004_s13, 48 }
 0x112   :  { %p4081_p12 = scmp.ne.s32.totalorder %s5004_s13, %s4080_s30  ;;  %p4084_p13 = scmp.lt.u32.totalorder %s4080_s30, %s5004_s13 }
 0x114   :  { %p4086_p0 = pnand %p4084_p13, %p4081_p12 }
 0x116   :  { %4089 = shalt.err (!%p4086_p0)
}
 0x117   :  { %s4090_s11 = scalar_lea.vmem %s167_s9, 48  ;;  %s4094_s2 = scalar_lea.vmem %s167_s9, 64 }
 0x118   :  { %p4091_p1 = scmp.ne.s32.totalorder %s167_s9, %s4090_s11  ;;  %p4095_p2 = scmp.lt.s32.totalorder %s167_s9, %s167_s9 }
 0x119   :  { %p4096_p3 = scmp.lt.s32.totalorder %s4094_s2, %s4090_s11 }
 0x11b   :  { %p4097_p4 = por %p4096_p3, %p4095_p2 }
 0x11d   :  { %p4098_p5 = pnand %p4097_p4, %p4091_p1 }
 0x11f   :  { %4101 = shalt.err (!%p4098_p5)
}
 0x120   :  { %172 = dma.hbm_to_vmem [thread:$0]  %s5004_s13, 48, %s167_s9, [#allocation18], %s5055_s25, %s5055_s25, %s4218_s29  }
 0x121   :  { %s4102_s27 = scalar_lea.hbm %s5006_s15, 48 }
 0x122   :  { %p4103_p6 = scmp.ne.s32.totalorder %s5006_s15, %s4102_s27  ;;  %p4106_p7 = scmp.lt.u32.totalorder %s4102_s27, %s5006_s15 }
 0x124   :  { %p4108_p8 = pnand %p4106_p7, %p4103_p6 }
 0x126   :  { %4111 = shalt.err (!%p4108_p8)
}
 0x127   :  { %s4112_s30 = scalar_lea.vmem %s4548_s7, 48  ;;  %s4116_s13 = scalar_lea.vmem %s4548_s7, 64 }
 0x128   :  { %p4113_p9 = scmp.ne.s32.totalorder %s4548_s7, %s4112_s30  ;;  %p4117_p10 = scmp.lt.s32.totalorder %s4548_s7, %s4548_s7 }
 0x129   :  { %p4118_p11 = scmp.lt.s32.totalorder %s4116_s13, %s4112_s30 }
 0x12b   :  { %p4119_p12 = por %p4118_p11, %p4117_p10 }
 0x12d   :  { %p4120_p13 = pnand %p4119_p12, %p4113_p9 }
 0x12f   :  { %4123 = shalt.err (!%p4120_p13)
}
 0x130   :  { %196 = dma.hbm_to_vmem [thread:$0]  %s5006_s15, 48, %s4548_s7, [#allocation21], %s5055_s25, %s5055_s25, %s4218_s29  }
 0x131   :  { %s4230_s16 = smov [#allocation25]   ;;  %s4231_s10 = smov [#allocation26]  }
 0x132   :  { %s214_s24 = sshll.u32 %s4230_s16, 4  ;;  %s230_s11 = sshll.u32 %s4231_s10, 4  ;;  %s215_s24 = int_to_ptr.vmem [resolvable:$true] %s214_s24  ;;  %s4586_s11 = int_to_ptr.vmem [resolvable:$true] %s230_s11 }
 0x133   :  { %s4124_s1 = scalar_lea.hbm %s5008_s17, 48 }
 0x134   :  { %p4125_p0 = scmp.ne.s32.totalorder %s5008_s17, %s4124_s1  ;;  %p4128_p1 = scmp.lt.u32.totalorder %s4124_s1, %s5008_s17 }
 0x136   :  { %p4130_p2 = pnand %p4128_p1, %p4125_p0 }
 0x138   :  { %4133 = shalt.err (!%p4130_p2)
}
 0x139   :  { %s4134_s15 = scalar_lea.vmem %s215_s24, 48  ;;  %s4138_s7 = scalar_lea.vmem %s215_s24, 64 }
 0x13a   :  { %p4135_p3 = scmp.ne.s32.totalorder %s215_s24, %s4134_s15  ;;  %p4139_p4 = scmp.lt.s32.totalorder %s215_s24, %s215_s24 }
 0x13b   :  { %p4140_p5 = scmp.lt.s32.totalorder %s4138_s7, %s4134_s15 }
 0x13d   :  { %p4141_p6 = por %p4140_p5, %p4139_p4 }
 0x13f   :  { %p4142_p7 = pnand %p4141_p6, %p4135_p3 }
 0x141   :  { %4145 = shalt.err (!%p4142_p7)
}
 0x142   :  { %220 = dma.hbm_to_vmem [thread:$0]  %s5008_s17, 48, %s215_s24, [#allocation24], %s5055_s25, %s5055_s25, %s4218_s29  }
 0x143   :  { %s4146_s13 = scalar_lea.hbm %s5011_s20, 3072 }
 0x144   :  { %p4147_p8 = scmp.ne.s32.totalorder %s5011_s20, %s4146_s13  ;;  %p4150_p9 = scmp.lt.u32.totalorder %s4146_s13, %s5011_s20 }
 0x146   :  { %p4152_p10 = pnand %p4150_p9, %p4147_p8 }
 0x148   :  { %4155 = shalt.err (!%p4152_p10)
}
 0x149   :  { %s4156_s2 = scalar_lea.vmem %s4586_s11, 3072  ;;  %p4161_p12 = scmp.lt.s32.totalorder %s4586_s11, %s4586_s11 }
 0x14a   :  { %p4157_p11 = scmp.ne.s32.totalorder %s4586_s11, %s4156_s2  ;;  %p4162_p13 = scmp.lt.s32.totalorder %s4156_s2, %s4156_s2 }
 0x14c   :  { %p4163_p0 = por %p4162_p13, %p4161_p12 }
 0x14e   :  { %p4164_p1 = pnand %p4163_p0, %p4157_p11 }
 0x150   :  { %4167 = shalt.err (!%p4164_p1)
}
 0x151   :  { %236 = dma.hbm_to_vmem [thread:$0]  %s5011_s20, 3072, %s4586_s11, [#allocation27], %s4213_s28, %s4213_s28, %s4214_s4  }
 0x152   :  { %4190 = dma.done.wait [#allocation3], 256  }
 0x153   :  { %4191 = vsyncadd [#allocation3], 4294967040 }
 0x154   :  { %4192 = dma.done.wait [#allocation6], 272  }
 0x155   :  { %4193 = vsyncadd [#allocation6], 4294967024 }
 0x156   :  { %4194 = dma.done.wait [#allocation9], 144  }
 0x157   :  { %4195 = vsyncadd [#allocation9], 4294967152 }
 0x158   :  { %4196 = dma.done.wait [#allocation12], 3120  }
 0x159   :  { %4197 = vsyncadd [#allocation12], 4294964176 }
 0x15a   :  { %4198 = dma.done.wait [#allocation15], 96  }
 0x15b   :  { %4199 = vsyncadd [#allocation15], 4294967200 }
 0x15c   :  { %4200 = dma.done.wait [#allocation18], 3120  }
 0x15d   :  { %4201 = vsyncadd [#allocation18], 4294964176 }
 0x15e   :  { %4202 = dma.done.wait [#allocation21], 96  }
 0x15f   :  { %4203 = vsyncadd [#allocation21], 4294967200 }
 0x160   :  { %4204 = dma.done.wait [#allocation24], 3120  }
 0x161   :  { %4205 = vsyncadd [#allocation24], 4294964176 }
 0x162   :  { %4206 = dma.done.wait [#allocation27], 3072  }
 0x163   :  { %4207 = vsyncadd [#allocation27], 4294964224  ;;  %v4232_v0 = vmov 0.0   ;;  %vm4233_vm0 = vmmov 0   ;;  %v4234_v1 = vmov 0   ;;  %s5056_s4 = sld [smem:[#allocation45_spill]]  ;;  %v296_v20 = vlaneseq }
 0x164   :  { %3298 = vmatprep.subr.bf16.mxu0 %v4232_v0  ;;  %3314 = vmatprep.mubr.msk.bf16.mxu0 %vm4233_vm0, %v4232_v0  ;;  %s5057_s5 = sld [smem:[#allocation40_spill]]  ;;  %s5058_s10 = sld [smem:[#allocation41_spill]]  ;;  %v381_v16 = vld [vmem:[#allocation2] sm:$0xff]  ;;  %v382_v17 = vld [vmem:[#allocation2 + $0x8] sm:$0xff]  ;;  %vm509_vm3 = vcmask 130048   ;;  %v3709_v37 = vld [vmem:[#allocation11 + $0x8] sm:$0xff]  }
 0x165   :  { %3683 = vset.pattern.permute.xlu0 %v4234_v1  ;;  %3684 = vset.pattern.permute.xlu1 %v4234_v1  ;;  %v399_v18 = vpack.c.bf16 %v382_v17, %v381_v16  ;;  %v4676_v21 = vand.u32 127, %v296_v20  ;;  %v2936_v26 = vld [vmem:[#allocation10] ss:$0 sm:$0xff]  ;;  %v3708_v36 = vld [vmem:[#allocation11] sm:$0xff]   ;;  %v3710_v38 = vld [vmem:[#allocation11 + $0x10] sm:$0xff]   ;;  %vm504_vm4 = vcmask 261120  }
 0x166   :  { %3330 = vmatprep.subr.bf16.mxu1 %v3708_v36  ;;  %v3711_v39 = vld [vmem:[#allocation11 + $0x18] sm:$0xff]   ;;  %v3712_v40 = vld [vmem:[#allocation11 + $0x20] sm:$0xff]   ;;  %v3713_v41 = vld [vmem:[#allocation11 + $0x28] sm:$0xff]   ;;  %s5062_s25 = sld [smem:[#allocation51_spill]]  ;;  %s4236_s24 = smov [#allocation28]  }
 0x167   :  { %3331 = vmatpush3.bf16.msra.mxu1 %v3708_v36  ;;  %vm2945_vm7 = vmneg %vm504_vm4  ;;  %v3714_v63 = vld [vmem:[#allocation11 + $0x30] sm:$0xff]   ;;  %v3715_v1 = vld [vmem:[#allocation11 + $0x38] sm:$0xff]   ;;  %vm2714_vm15 = vcmp.lt.s32.totalorder %v4676_v21, 32  ;;  %s2908_s11 = sshll.u32 %s4236_s24, 4  ;;  %s2909_s11 = int_to_ptr.vmem [resolvable:$true] %s2908_s11 }
 0x168   :  { %3332 = vmatprep.subr.bf16.mxu1 %v3709_v37  ;;  %vm4704_vm8 = vmpackc.low %vm2945_vm7, %vm2945_vm7  ;;  %v2964_v36 = vld [vmem:[#allocation16] ss:$0 sm:$0xff]  ;;  %v3780_v49 = vld [vmem:[#allocation17 + $0x80] sm:$0xff]   ;;  %p4173_p3 = scmp.lt.s32.totalorder %s2909_s11, %s2909_s11 }
 0x169   :  { %v3700_v2 = vld [vmem:[%s5056_s4] sm:$0xff]   ;;  %v3701_v3 = vld [vmem:[%s5056_s4 + $0x8] sm:$0xff]   ;;  %v3702_v4 = vld [vmem:[%s5056_s4 + $0x10] sm:$0xff]  }
 0x16a   :  { %3299 = vmatpush3.bf16.msra.mxu0 %v3700_v2  ;;  %v298_v5 = vld [vmem:[%s5057_s5] sm:$0xff]  ;;  %v300_v6 = vld [vmem:[%s5057_s5 + $0x10] sm:$0xff]  ;;  %v3703_v7 = vld [vmem:[%s5056_s4 + $0x18] sm:$0xff]  }
 0x16b   :  { %3300 = vmatprep.subr.bf16.mxu0 %v4232_v0  ;;  %303 = vperm.xlu0 %3683, %v298_v5   ;;  %v299_v8 = vld [vmem:[%s5057_s5 + $0x8] sm:$0xff]  ;;  %v301_v9 = vld [vmem:[%s5057_s5 + $0x18] sm:$0xff]  ;;  %v3704_v10 = vld [vmem:[%s5056_s4 + $0x20] sm:$0xff]  }
 0x16c   :  { %309 = vperm.xlu1 %3684, %v300_v6   ;;  %v328_v11 = vld [vmem:[%s5058_s10] sm:$0xff]  ;;  %v3705_v12 = vld [vmem:[%s5056_s4 + $0x28] sm:$0xff]   ;;  %v330_v13 = vld [vmem:[%s5058_s10 + $0x10] sm:$0xff]  ;;  %3333 = vmatpush3.bf16.msra.mxu1 %v3709_v37 }
 0x16d   :  { %v3706_v14 = vld [vmem:[%s5056_s4 + $0x30] sm:$0xff]   ;;  %v3707_v15 = vld [vmem:[%s5056_s4 + $0x38] sm:$0xff]   ;;  %s4235_s4 = smov 32   ;;  %v329_v34 = vld [vmem:[%s5058_s10 + $0x8] sm:$0xff]  ;;  %3334 = vmatprep.subr.bf16.mxu1 %v3710_v38 }
 0x16e   :  { %3301 = vmatpush3.bf16.msra.mxu0 %v3701_v3  ;;  %v331_v35 = vld [vmem:[%s5058_s10 + $0x18] sm:$0xff]  ;;  %v3717_v3 = vld [vmem:[#allocation17 + $0x8] sm:$0xff]   ;;  %v3719_v5 = vld [vmem:[#allocation17 + $0x18] sm:$0xff]  }
 0x16f   :  { %3302 = vmatprep.subr.bf16.mxu0 %v4232_v0  ;;  %306 = vperm.xlu0 %3683, %v299_v8   ;;  %v3716_v2 = vld [vmem:[#allocation17] sm:$0xff]  }
 0x170   :  { %312 = vperm.xlu1 %3684, %v301_v9   ;;  %3335 = vmatpush3.bf16.msra.mxu1 %v3710_v38  ;;  %v3720_v6 = vld [vmem:[#allocation17 + $0x20] sm:$0xff]  }
 0x171   :  { %3336 = vmatprep.subr.bf16.mxu1 %v3711_v39  ;;  %v3129_v8 = vld [vmem:[#allocation7] sm:$0xff]  }
 0x172   :  { %3303 = vmatpush3.bf16.msra.mxu0 %v3702_v4  ;;  %v3718_v4 = vld [vmem:[#allocation17 + $0x10] sm:$0xff]  }
 0x173   :  { %3304 = vmatprep.subr.bf16.mxu0 %v4232_v0 }
 0x174   :  { %333 = vperm.xlu1 %3684, %v328_v11   ;;  %3337 = vmatpush3.bf16.msra.mxu1 %v3711_v39 }
 0x175   :  { %3338 = vmatprep.subr.bf16.mxu1 %v3712_v40 }
 0x176   :  { %3305 = vmatpush3.bf16.msra.mxu0 %v3703_v7  ;;  %v3136_v7 = vld [vmem:[#allocation7 + $0x8] sm:$0xff]  }
 0x177   :  { %3306 = vmatprep.subr.bf16.mxu0 %v4232_v0  ;;  %v4735_v9 = vunpack.c.l.bf16 %v3136_v7 }
 0x178   :  { %339 = vperm.xlu1 %3684, %v330_v13   ;;  %3339 = vmatpush3.bf16.msra.mxu1 %v3712_v40  ;;  %v4741_v13 = vunpack.c.h.bf16 %v3129_v8 }
 0x179   :  { %3340 = vmatprep.subr.bf16.mxu1 %v3713_v41 }
 0x17a   :  { %3307 = vmatpush3.bf16.msra.mxu0 %v3704_v10  ;;  %v4737_v10 = vunpack.c.h.bf16 %v3136_v7  ;;  %v359_v7 = vshrl.u32 %v296_v20, 7 }
 0x17b   :  { %3308 = vmatprep.subr.bf16.mxu0 %v4232_v0 }
 0x17c   :  { %3341 = vmatpush3.bf16.msra.mxu1 %v3713_v41 }
 0x17d   :  { %3342 = vmatprep.subr.bf16.mxu1 %v3714_v63 }
 0x17e   :  { %3309 = vmatpush3.bf16.msra.mxu0 %v3705_v12  ;;  %v4739_v12 = vunpack.c.l.bf16 %v3129_v8 }
 0x17f   :  { %3310 = vmatprep.subr.bf16.mxu0 %v4232_v0 }
 0x180   :  { %3343 = vmatpush3.bf16.msra.mxu1 %v3714_v63 }
 0x181   :  { %3344 = vmatprep.subr.bf16.mxu1 %v3715_v1 }
 0x182   :  { %3311 = vmatpush3.bf16.msra.mxu0 %v3706_v14 }
 0x183   :  { %3312 = vmatprep.subr.bf16.mxu0 %v4232_v0 }
 0x184   :  { %3345 = vmatpush3.bf16.msra.mxu1 %v3715_v1  ;;  %v2974_v1 = vld [vmem:[#allocation20] ss:$0 sm:$0xff] }
 0x185   :  { %3370 = vmatprep.subr.bf16.mxu1 %v4232_v0 }
 0x186   :  { %3313 = vmatpush3.bf16.msra.mxu0 %v3707_v15 }
 0x189   :  { %3315 = vmatmul.mubr.bf16.vlgmr.msra.gmra.mrb[0].mxu0 %v399_v18 }
 0x1ea   :  { %v304_v19 = vpop.permute.xlu0 %303 }
 0x1eb   :  { %vm314_vm1 = vcmp.eq.s32.totalorder %v304_v19, %v4676_v21  ;;  %v310_v42 = vpop.permute.xlu1 %309 }
 0x1ec   :  { %v2925_v23 = vsel %vm314_vm1, 1.0, %v4232_v0  ;;  %vm316_vm5 = vcmp.eq.s32.totalorder %v310_v42, %v4676_v21 }
 0x1ed   :  { %v2927_v47 = vsel %vm316_vm5, 1.0, %v4232_v0 }
 0x1ee   :  { %v307_v22 = vpop.permute.xlu0 %306 }
 0x1ef   :  { %vm315_vm2 = vcmp.eq.s32.totalorder %v307_v22, %v4676_v21  ;;  %v313_v43 = vpop.permute.xlu1 %312 }
 0x1f0   :  { %v2926_v24 = vsel %vm315_vm2, 1.0, %v4232_v0  ;;  %vm317_vm6 = vcmp.eq.s32.totalorder %v313_v43, %v4676_v21 }
 0x1f1   :  { %v4682_v25 = vpack.c.bf16 %v2926_v24, %v2925_v23  ;;  %v2928_v48 = vsel %vm317_vm6, 1.0, %v4232_v0 }
 0x1f2   :  { %v4708_v51 = vpack.c.bf16 %v2928_v48, %v2927_v47 }
 0x1f3   :  { %3320 = vmatprep.mubr.msk.bf16.mxu0 %vm509_vm3, %v4682_v25  ;;  %v334_v53 = vpop.permute.xlu1 %333 }
 0x1f4   :  { %vm344_vm9 = vcmp.eq.s32.totalorder %v334_v53, %v4676_v21 }
 0x1f5   :  { %v2929_v56 = vsel %vm344_vm9, 1.0, %v4232_v0 }
 0x1f7   :  { %v340_v54 = vpop.permute.xlu1 %339 }
 0x1f8   :  { %vm346_vm11 = vcmp.eq.s32.totalorder %v340_v54, %v4676_v21 }
 0x1f9   :  { %v2931_v60 = vsel %vm346_vm11, 1.0, %v4232_v0 }
 0x25c   :  { %v489_v27 = vpop.f32.mrb[0].mxu0 }
 0x25d   :  { %v3316_v28 = vpop.f32.mrb[1].mxu0  ;;  %v4686_v30 = vadd.f32 %v2936_v26, %v489_v27  ;;  %v3722_v27 = vld [vmem:[#allocation17 + $0x30] sm:$0xff]  }
 0x25e   :  { %v492_v29 = vpop.f32.mrb[2].mxu0  ;;  %v3723_v28 = vld [vmem:[#allocation17 + $0x38] sm:$0xff]  }
 0x25f   :  { %v4688_v31 = vadd.f32 %v2936_v26, %v492_v29  ;;  %v3317_v32 = vpop.f32.mrb[3].mxu0  ;;  %v3721_v26 = vld [vmem:[#allocation17 + $0x28] sm:$0xff]   ;;  %v2954_v29 = vld [vmem:[#allocation13] ss:$0 sm:$0xff] }
 0x261   :  { %v3685_v33 = vpack.i.bf16 %v4688_v31, %v4686_v30  ;;  %v507_v52 = vpack.c.bf16 %v4688_v31, %v4686_v30 }
 0x263   :  { %3686 = vrot.lane.b32.xlu0 %v3685_v33, %s4235_s4  ;;  %v2963_v33 = vld [vmem:[#allocation14] ss:$0 sm:$0xff] }
 0x267   :  { %336 = vperm.xlu0 %3683, %v329_v34  }
 0x26b   :  { %342 = vperm.xlu0 %3683, %v331_v35  }
 0x2d5   :  { %v3687_v44 = vpop.permute.xlu0 %3686 }
 0x2d6   :  { %v3689_v45 = vunpack.i.h.bf16 %v3687_v44  ;;  %v3688_v46 = vunpack.i.l.bf16 %v3687_v44 }
 0x2d8   :  { %v2948_v50 = vpack.c.bf16 %v3689_v45, %v3688_v46 }
 0x2da   :  { %3318 = vmatprep.subr.msk.bf16.mxu0 %vm4704_vm8, %v2948_v50 }
 0x2db   :  { %3319 = vmatpush3.bf16.msk.msra.mxu0 %vm4704_vm8, %v2948_v50 }
 0x2dc   :  { %3324 = vmatprep.subr.bf16.mxu0 %v507_v52 }
 0x2de   :  { %3321 = vmatmul.mubr.msk.bf16.vlgmr.msra.gmra.mrb[4].mxu0 %vm509_vm3, %v4708_v51 }
 0x2df   :  { %3325 = vmatpush3.bf16.msra.mxu0 %v507_v52 }
 0x2e0   :  { %3350 = vmatprep.subr.bf16.mxu0 %v3716_v2 }
 0x2e6   :  { %v337_v55 = vpop.permute.xlu0 %336 }
 0x2e7   :  { %vm345_vm10 = vcmp.eq.s32.totalorder %v337_v55, %v4676_v21 }
 0x2e8   :  { %v2930_v57 = vsel %vm345_vm10, 1.0, %v4232_v0 }
 0x2e9   :  { %v4723_v58 = vpack.c.bf16 %v2930_v57, %v2929_v56 }
 0x2ea   :  { %v343_v59 = vpop.permute.xlu0 %342 }
 0x2eb   :  { %vm347_vm12 = vcmp.eq.s32.totalorder %v343_v59, %v4676_v21  ;;  %3326 = vmatprep.mubr.msk.bf16.mxu0 %vm509_vm3, %v4723_v58  ;;  %v2965_v59 = vld [vmem:[#allocation19] ss:$0 sm:$0xff] }
 0x2ec   :  { %v2932_v61 = vsel %vm347_vm12, 1.0, %v4232_v0 }
 0x2ed   :  { %v4730_v62 = vpack.c.bf16 %v2932_v61, %v2931_v60 }
 0x2ef   :  { %3327 = vmatmul.mubr.msk.bf16.vlgmr.msra.gmra.mrb[4].mxu0 %vm509_vm3, %v4730_v62 }
 0x2f0   :  { %3351 = vmatpush3.bf16.msra.mxu0 %v3716_v2 }
 0x2f1   :  { %3352 = vmatprep.subr.bf16.mxu0 %v3717_v3 }
 0x2f4   :  { %3353 = vmatpush3.bf16.msra.mxu0 %v3717_v3 }
 0x2f5   :  { %3354 = vmatprep.subr.bf16.mxu0 %v3718_v4 }
 0x2f8   :  { %3355 = vmatpush3.bf16.msra.mxu0 %v3718_v4 }
 0x2f9   :  { %3356 = vmatprep.subr.bf16.mxu0 %v3719_v5 }
 0x2fc   :  { %3357 = vmatpush3.bf16.msra.mxu0 %v3719_v5 }
 0x2fd   :  { %3358 = vmatprep.subr.bf16.mxu0 %v3720_v6 }
 0x300   :  { %3359 = vmatpush3.bf16.msra.mxu0 %v3720_v6 }
 0x301   :  { %3360 = vmatprep.subr.bf16.mxu0 %v3721_v26 }
 0x304   :  { %3361 = vmatpush3.bf16.msra.mxu0 %v3721_v26 }
 0x305   :  { %3362 = vmatprep.subr.bf16.mxu0 %v3722_v27 }
 0x308   :  { %3363 = vmatpush3.bf16.msra.mxu0 %v3722_v27 }
 0x309   :  { %3364 = vmatprep.subr.bf16.mxu0 %v3723_v28 }
 0x30c   :  { %3365 = vmatpush3.bf16.msra.mxu0 %v3723_v28 }
 0x30d   :  { %3398 = vmatprep.subr.bf16.mxu0 %v4232_v0 }
 0x3c2   :  { %v3328_v11 = vpop.f32.mrb[4].mxu0 }
 0x3c3   :  { %v605_v14 = vpop.f32.mrb[5].mxu0  ;;  %v622_v16 = vadd.f32 %v3328_v11, %v4735_v9 }
 0x3c4   :  { %v3329_v15 = vpop.f32.mrb[6].mxu0  ;;  %v620_v19 = vadd.f32 %v4739_v12, %v605_v14 }
 0x3c5   :  { %v623_v17 = vadd.f32 %v3329_v15, %v4737_v10  ;;  %v608_v18 = vpop.f32.mrb[7].mxu0 }
 0x3c6   :  { %v621_v22 = vadd.f32 %v4741_v13, %v608_v18 }
 0x3c7   :  { %v641_v23 = vpack.c.bf16 %v623_v17, %v622_v16  ;;  %v2975_v16 = vld [vmem:[#allocation22] ss:$0 sm:$0xff] }
 0x3c8   :  { %v640_v24 = vpack.c.bf16 %v621_v22, %v620_v19  ;;  %v360_v22 = vadd.s32 8, %v359_v7 }
 0x3ca   :  { %3346 = vmatprep.mubr.bf16.mxu1 %v640_v24  ;;  %v2933_v24 = vld [vmem:[#allocation5] ss:$0 sm:$0xff] }
 0x3cb   :  { %3347 = vmatmul.mubr.bf16.vlgmr.msra.gmra.mrb[0].mxu1 %v641_v23  ;;  %vm366_vm13 = vcmp.eq.s32.totalorder %v2933_v24, %v359_v7  ;;  %vm367_vm14 = vcmp.eq.s32.totalorder %v2933_v24, %v360_v22  ;;  %v2988_v22 = vld [vmem:[%s5012_s21] ss:$0 sm:$0xff] }
 0x3cc   :  { %3374 = vmatprep.mubr.msk.bf16.mxu1 %vm4233_vm0, %v4232_v0  ;;  %v2934_v20 = vsel %vm366_vm13, 1.0, %v4232_v0 }
 0x49e   :  { %v3348_v32 = vpop.f32.mrb[0].mxu1 }
 0x49f   :  { %v740_v34 = vadd.f32 %v3348_v32, %v2954_v29  ;;  %v731_v35 = vpop.f32.mrb[1].mxu1 }
 0x4a0   :  { %v732_v37 = vadd.f32 %v2954_v29, %v731_v35  ;;  %v3349_v38 = vpop.f32.mrb[2].mxu1 }
 0x4a1   :  { %v755_v39 = vmul.f32 %v2963_v33, %v740_v34  ;;  %v743_v40 = vadd.f32 %v3349_v38, %v2954_v29  ;;  %v734_v41 = vpop.f32.mrb[3].mxu1  ;;  %v2935_v34 = vsel %vm367_vm14, 1.0, %v4232_v0  ;;  %v3726_v38 = vld [vmem:[#allocation23 + $0x10] sm:$0xff]  }
 0x4a2   :  { %v753_v42 = vmul.f32 %v2963_v33, %v732_v37  ;;  %v735_v43 = vadd.f32 %v2954_v29, %v734_v41  ;;  %v4756_v35 = vpack.c.bf16 %v2935_v34, %v2934_v20  ;;  %v3725_v37 = vld [vmem:[#allocation23 + $0x8] sm:$0xff]   ;;  %v2998_v20 = vld [vmem:[%s5014_s23] ss:$0 sm:$0xff] }
 0x4a3   :  { %v766_v44 = vadd.f32 %v2964_v36, %v755_v39  ;;  %v756_v45 = vmul.f32 %v2963_v33, %v743_v40  ;;  %v3727_v39 = vld [vmem:[#allocation23 + $0x18] sm:$0xff]   ;;  %v3728_v40 = vld [vmem:[#allocation23 + $0x20] sm:$0xff]   ;;  %v3729_v41 = vld [vmem:[#allocation23 + $0x28] sm:$0xff]  }
 0x4a4   :  { %v764_v46 = vadd.f32 %v2964_v36, %v753_v42  ;;  %v754_v47 = vmul.f32 %v2963_v33, %v735_v43  ;;  %v3730_v42 = vld [vmem:[#allocation23 + $0x30] sm:$0xff]   ;;  %v3731_v43 = vld [vmem:[#allocation23 + $0x38] sm:$0xff]  }
 0x4a5   :  { %v767_v48 = vadd.f32 %v2964_v36, %v756_v45  ;;  %v770_v52 = vmax.f32 %v766_v44, 0.0  ;;  %v3732_v44 = vld [vmem:[#allocation26] sm:$0xff]   ;;  %v3733_v45 = vld [vmem:[#allocation26 + $0x8] sm:$0xff]  }
 0x4a6   :  { %v765_v50 = vadd.f32 %v2964_v36, %v754_v47  ;;  %v768_v54 = vmax.f32 %v764_v46, 0.0  ;;  %v3724_v36 = vld [vmem:[#allocation23] sm:$0xff]   ;;  %v3734_v46 = vld [vmem:[#allocation26 + $0x10] sm:$0xff]  }
 0x4a7   :  { %v771_v53 = vmax.f32 %v767_v48, 0.0  ;;  %v3735_v47 = vld [vmem:[#allocation26 + $0x18] sm:$0xff]   ;;  %v3736_v48 = vld [vmem:[#allocation26 + $0x20] sm:$0xff]  }
 0x4a8   :  { %v769_v55 = vmax.f32 %v765_v50, 0.0 }
 0x4a9   :  { %v789_v56 = vpack.c.bf16 %v771_v53, %v770_v52 }
 0x4aa   :  { %v788_v57 = vpack.c.bf16 %v769_v55, %v768_v54 }
 0x4ac   :  { %3366 = vmatprep.mubr.bf16.mxu0 %v788_v57 }
 0x4ad   :  { %3367 = vmatmul.mubr.bf16.vlgmr.msra.gmra.mrb[8].mxu0 %v789_v56 }
 0x4ae   :  { %3414 = vmatprep.mubr.msk.bf16.mxu0 %vm4233_vm0, %v4232_v0  ;;  %3399 = vmatpush3.bf16.msra.mxu0 %v3732_v44  ;;  %v3741_v44 = vld [vmem:[#allocation11 + $0x48] sm:$0xff]  }
 0x4af   :  { %3400 = vmatprep.subr.bf16.mxu0 %v4232_v0 }
 0x4b2   :  { %3401 = vmatpush3.bf16.msra.mxu0 %v3733_v45  ;;  %v3742_v45 = vld [vmem:[#allocation11 + $0x50] sm:$0xff]  }
 0x4b3   :  { %3402 = vmatprep.subr.bf16.mxu0 %v4232_v0 }
 0x4b6   :  { %3403 = vmatpush3.bf16.msra.mxu0 %v3734_v46  ;;  %v3743_v46 = vld [vmem:[#allocation11 + $0x58] sm:$0xff]  }
 0x4b7   :  { %3404 = vmatprep.subr.bf16.mxu0 %v4232_v0 }
 0x4ba   :  { %3405 = vmatpush3.bf16.msra.mxu0 %v3735_v47 }
 0x4bb   :  { %3406 = vmatprep.subr.bf16.mxu0 %v4232_v0 }
 0x4be   :  { %3407 = vmatpush3.bf16.msra.mxu0 %v3736_v48 }
 0x4bf   :  { %3408 = vmatprep.subr.bf16.mxu0 %v4232_v0 }
 0x580   :  { %v3368_v60 = vpop.f32.mrb[8].mxu0 }
 0x581   :  { %v888_v61 = vadd.f32 %v3368_v60, %v2965_v59  ;;  %v879_v63 = vpop.f32.mrb[9].mxu0  ;;  %v3738_v60 = vld [vmem:[#allocation26 + $0x30] sm:$0xff]  }
 0x582   :  { %v880_v2 = vadd.f32 %v2965_v59, %v879_v63  ;;  %v3369_v3 = vpop.f32.mrb[10].mxu0  ;;  %v2977_v63 = vld [vmem:[#allocation25] ss:$0 sm:$0xff] }
 0x583   :  { %v896_v4 = vmax.f32 %v888_v61, 0.0  ;;  %v891_v5 = vadd.f32 %v3369_v3, %v2965_v59  ;;  %v882_v6 = vpop.f32.mrb[11].mxu0  ;;  %v3739_v61 = vld [vmem:[#allocation26 + $0x38] sm:$0xff]  }
 0x584   :  { %v894_v8 = vmax.f32 %v880_v2, 0.0  ;;  %v883_v11 = vadd.f32 %v2965_v59, %v882_v6  ;;  %v3737_v59 = vld [vmem:[#allocation26 + $0x28] sm:$0xff]   ;;  %v2986_v2 = vld [vmem:[%s5009_s18] ss:$0 sm:$0xff] }
 0x585   :  { %v907_v14 = vmul.f32 %v2974_v1, %v896_v4  ;;  %v897_v15 = vmax.f32 %v891_v5, 0.0  ;;  %3409 = vmatpush3.bf16.msra.mxu0 %v3737_v59  ;;  %v2987_v5 = vld [vmem:[%s5010_s19] ss:$0 sm:$0xff]  ;;  %v3750_v59 = vld [vmem:[#allocation17 + $0x50] sm:$0xff]  }
 0x586   :  { %v905_v17 = vmul.f32 %v2974_v1, %v894_v8  ;;  %v895_v18 = vmax.f32 %v883_v11, 0.0  ;;  %3410 = vmatprep.subr.bf16.mxu0 %v4232_v0 }
 0x587   :  { %v908_v19 = vmul.f32 %v2974_v1, %v897_v15  ;;  %v918_v26 = vadd.f32 %v2975_v16, %v907_v14 }
 0x588   :  { %v906_v23 = vmul.f32 %v2974_v1, %v895_v18  ;;  %v916_v28 = vadd.f32 %v2975_v16, %v905_v17 }
 0x589   :  { %v919_v27 = vadd.f32 %v2975_v16, %v908_v19  ;;  %3411 = vmatpush3.bf16.msra.mxu0 %v3738_v60  ;;  %v3751_v60 = vld [vmem:[#allocation17 + $0x58] sm:$0xff]  }
 0x58a   :  { %v917_v29 = vadd.f32 %v2975_v16, %v906_v23  ;;  %3412 = vmatprep.subr.bf16.mxu0 %v4232_v0 }
 0x58b   :  { %v921_v32 = vpack.c.bf16 %v919_v27, %v918_v26  ;;  %v2997_v27 = vld [vmem:[%s5013_s22] ss:$0 sm:$0xff] }
 0x58c   :  { %v920_v33 = vpack.c.bf16 %v917_v29, %v916_v28 }
 0x58d   :  { %3413 = vmatpush3.bf16.msra.mxu0 %v3739_v61  ;;  %v3752_v61 = vld [vmem:[#allocation17 + $0x60] sm:$0xff]  }
 0x58e   :  { %3371 = vmatpush3.bf16.msra.mxu1 %v920_v33 }
 0x58f   :  { %3372 = vmatprep.subr.bf16.mxu1 %v4232_v0 }
 0x592   :  { %3373 = vmatpush3.bf16.msra.mxu1 %v921_v32 }
 0x593   :  { %3378 = vmatprep.subr.bf16.mxu1 %v4232_v0 }
 0x595   :  { %3375 = vmatmul.mubr.msk.bf16.vlgmr.msra.gmra.mrb[4].mxu1 %vm504_vm4, %v4756_v35 }
 0x596   :  { %3379 = vmatpush3.bf16.msra.mxu1 %v3724_v36  ;;  %3394 = vmatprep.mubr.msk.bf16.mxu1 %vm4233_vm0, %v4232_v0 }
 0x597   :  { %3380 = vmatprep.subr.bf16.mxu1 %v4232_v0 }
 0x59a   :  { %3381 = vmatpush3.bf16.msra.mxu1 %v3725_v37 }
 0x59b   :  { %3382 = vmatprep.subr.bf16.mxu1 %v4232_v0 }
 0x59e   :  { %3383 = vmatpush3.bf16.msra.mxu1 %v3726_v38 }
 0x59f   :  { %3384 = vmatprep.subr.bf16.mxu1 %v4232_v0 }
 0x5a2   :  { %3385 = vmatpush3.bf16.msra.mxu1 %v3727_v39 }
 0x5a3   :  { %3386 = vmatprep.subr.bf16.mxu1 %v4232_v0 }
 0x5a6   :  { %3387 = vmatpush3.bf16.msra.mxu1 %v3728_v40 }
 0x5a7   :  { %3388 = vmatprep.subr.bf16.mxu1 %v4232_v0 }
 0x5aa   :  { %3389 = vmatpush3.bf16.msra.mxu1 %v3729_v41 }
 0x5ab   :  { %3390 = vmatprep.subr.bf16.mxu1 %v4232_v0 }
 0x5ae   :  { %3391 = vmatpush3.bf16.msra.mxu1 %v3730_v42 }
 0x5af   :  { %3392 = vmatprep.subr.bf16.mxu1 %v4232_v0 }
 0x5b2   :  { %3393 = vmatpush3.bf16.msra.mxu1 %v3731_v43  ;;  %v3740_v43 = vld [vmem:[#allocation11 + $0x40] sm:$0xff]  }
 0x5b3   :  { %3430 = vmatprep.subr.bf16.mxu0 %v3740_v43 }
 0x668   :  { %v959_v50 = vpop.f32.mrb[4].mxu1 }
 0x669   :  { %v3376_v52 = vpop.f32.mrb[5].mxu1  ;;  %v966_v54 = vadd.f32 %v959_v50, %v4686_v30 }
 0x66a   :  { %v962_v53 = vpop.f32.mrb[6].mxu1 }
 0x66b   :  { %v967_v55 = vadd.f32 %v962_v53, %v4688_v31  ;;  %v3377_v56 = vpop.f32.mrb[7].mxu1 }
 0x66c   :  { %v3748_v56 = vld [vmem:[#allocation17 + $0x40] sm:$0xff]  }
 0x66d   :  { %v984_v57 = vpack.c.bf16 %v967_v55, %v966_v54  ;;  %v3746_v54 = vld [vmem:[#allocation11 + $0x70] sm:$0xff]   ;;  %v3747_v55 = vld [vmem:[#allocation11 + $0x78] sm:$0xff]  }
 0x66f   :  { %3395 = vmatmul.mubr.bf16.vlgmr.msra.gmra.mrb[8].mxu1 %v984_v57  ;;  %v3749_v57 = vld [vmem:[#allocation17 + $0x48] sm:$0xff]  }
 0x670   :  { %3420 = vmatprep.mubr.msk.bf16.mxu1 %vm509_vm3, %v4682_v25 }
 0x742   :  { %v1074_v1 = vpop.f32.mrb[8].mxu1 }
 0x743   :  { %v1075_v3 = vadd.f32 %v2977_v63, %v1074_v1  ;;  %v3396_v4 = vpop.f32.mrb[9].mxu1 }
 0x744   :  { %v1077_v6 = vpop.f32.mrb[10].mxu1 }
 0x745   :  { %v1088_v7 = vmul.f32 %v2986_v2, %v1075_v3  ;;  %v1078_v8 = vadd.f32 %v2977_v63, %v1077_v6  ;;  %v3397_v11 = vpop.f32.mrb[11].mxu1 }
 0x747   :  { %v1097_v14 = vadd.f32 %v2987_v5, %v1088_v7  ;;  %v1089_v15 = vmul.f32 %v2986_v2, %v1078_v8 }
 0x749   :  { %v1098_v16 = vadd.f32 %v2987_v5, %v1089_v15  ;;  %v1099_v17 = vmax.f32 %v1097_v14, 0.0  ;;  %v3753_v14 = vld [vmem:[#allocation17 + $0x68] sm:$0xff]   ;;  %v3754_v15 = vld [vmem:[#allocation17 + $0x70] sm:$0xff]  }
 0x74b   :  { %v1100_v18 = vmax.f32 %v1098_v16, 0.0  ;;  %v3755_v16 = vld [vmem:[#allocation17 + $0x78] sm:$0xff]  }
 0x74d   :  { %v1117_v19 = vpack.c.bf16 %v1100_v18, %v1099_v17  ;;  %v3008_v17 = vld [vmem:[#allocation13 + $0x1] ss:$0 sm:$0xff] }
 0x74f   :  { %3415 = vmatmul.mubr.bf16.vlgmr.msra.gmra.mrb[12].mxu0 %v1117_v19  ;;  %v3017_v19 = vld [vmem:[#allocation14 + $0x1] ss:$0 sm:$0xff] }
 0x750   :  { %3431 = vmatpush3.bf16.msra.mxu0 %v3740_v43 }
 0x751   :  { %3432 = vmatprep.subr.bf16.mxu0 %v3741_v44 }
 0x754   :  { %3433 = vmatpush3.bf16.msra.mxu0 %v3741_v44 }
 0x755   :  { %3434 = vmatprep.subr.bf16.mxu0 %v3742_v45 }
 0x758   :  { %3435 = vmatpush3.bf16.msra.mxu0 %v3742_v45 }
 0x759   :  { %3436 = vmatprep.subr.bf16.mxu0 %v3743_v46 }
 0x75c   :  { %3437 = vmatpush3.bf16.msra.mxu0 %v3743_v46 }
 0x822   :  { %v1207_v23 = vpop.f32.mrb[12].mxu0 }
 0x823   :  { %v1208_v24 = vadd.f32 %v2988_v22, %v1207_v23  ;;  %v3416_v26 = vpop.f32.mrb[13].mxu0 }
 0x824   :  { %v1210_v28 = vpop.f32.mrb[14].mxu0 }
 0x825   :  { %v1214_v29 = vmax.f32 %v1208_v24, 0.0  ;;  %v1211_v32 = vadd.f32 %v2988_v22, %v1210_v28  ;;  %v3417_v33 = vpop.f32.mrb[15].mxu0  ;;  %v3018_v24 = vld [vmem:[#allocation16 + $0x1] ss:$0 sm:$0xff] }
 0x827   :  { %v1223_v34 = vmul.f32 %v2997_v27, %v1214_v29  ;;  %v1215_v36 = vmax.f32 %v1211_v32, 0.0 }
 0x829   :  { %v1232_v37 = vadd.f32 %v2998_v20, %v1223_v34  ;;  %v1224_v38 = vmul.f32 %v2997_v27, %v1215_v36 }
 0x82b   :  { %v1233_v39 = vadd.f32 %v2998_v20, %v1224_v38  ;;  %v4797_v40 = vadd.f32 %v1232_v37, %v4686_v30  ;;  %v3744_v30 = vld [vmem:[#allocation11 + $0x60] sm:$0xff]  }
 0x82c   :  { %3438 = vmatprep.subr.bf16.mxu0 %v3744_v30 }
 0x82d   :  { %v4800_v41 = vadd.f32 %v1233_v39, %v4688_v31  ;;  %v3745_v31 = vld [vmem:[#allocation11 + $0x68] sm:$0xff]   ;;  %3439 = vmatpush3.bf16.msra.mxu0 %v3744_v30 }
 0x82e   :  { %3440 = vmatprep.subr.bf16.mxu0 %v3745_v31 }
 0x82f   :  { %v3690_v42 = vpack.i.bf16 %v4800_v41, %v4797_v40  ;;  %v1246_v53 = vpack.c.bf16 %v4800_v41, %v4797_v40 }
 0x831   :  { %3691 = vrot.lane.b32.xlu1 %v3690_v42, %s4235_s4  ;;  %3441 = vmatpush3.bf16.msra.mxu0 %v3745_v31 }
 0x832   :  { %3442 = vmatprep.subr.bf16.mxu0 %v3746_v54 }
 0x835   :  { %3443 = vmatpush3.bf16.msra.mxu0 %v3746_v54  ;;  %v3761_v54 = vld [vmem:[#allocation23 + $0x68] sm:$0xff]  }
 0x836   :  { %3444 = vmatprep.subr.bf16.mxu0 %v3747_v55 }
 0x839   :  { %3445 = vmatpush3.bf16.msra.mxu0 %v3747_v55  ;;  %v3019_v55 = vld [vmem:[#allocation19 + $0x1] ss:$0 sm:$0xff] }
 0x83a   :  { %3470 = vmatprep.subr.bf16.mxu0 %v4232_v0 }
 0x8a3   :  { %v3692_v47 = vpop.permute.xlu1 %3691 }
 0x8a4   :  { %v3694_v48 = vunpack.i.h.bf16 %v3692_v47  ;;  %v3693_v50 = vunpack.i.l.bf16 %v3692_v47  ;;  %v3756_v47 = vld [vmem:[#allocation23 + $0x40] sm:$0xff]  }
 0x8a6   :  { %v3002_v52 = vpack.c.bf16 %v3694_v48, %v3693_v50  ;;  %v3757_v48 = vld [vmem:[#allocation23 + $0x48] sm:$0xff]   ;;  %v3758_v50 = vld [vmem:[#allocation23 + $0x50] sm:$0xff]  }
 0x8a8   :  { %3418 = vmatprep.subr.msk.bf16.mxu1 %vm4704_vm8, %v3002_v52 }
 0x8a9   :  { %3419 = vmatpush3.bf16.msk.msra.mxu1 %vm4704_vm8, %v3002_v52  ;;  %v3759_v52 = vld [vmem:[#allocation23 + $0x58] sm:$0xff]  }
 0x8aa   :  { %3424 = vmatprep.subr.bf16.mxu1 %v1246_v53 }
 0x8ac   :  { %3421 = vmatmul.mubr.msk.bf16.vlgmr.msra.gmra.mrb[12].mxu1 %vm509_vm3, %v4708_v51 }
 0x8ad   :  { %3425 = vmatpush3.bf16.msra.mxu1 %v1246_v53  ;;  %3426 = vmatprep.mubr.msk.bf16.mxu1 %vm509_vm3, %v4723_v58  ;;  %v3760_v53 = vld [vmem:[#allocation23 + $0x60] sm:$0xff]  }
 0x8ae   :  { %3450 = vmatprep.subr.bf16.mxu1 %v3748_v56 }
 0x8b8   :  { %3427 = vmatmul.mubr.msk.bf16.vlgmr.msra.gmra.mrb[12].mxu1 %vm509_vm3, %v4730_v62 }
 0x8b9   :  { %3451 = vmatpush3.bf16.msra.mxu1 %v3748_v56 }
 0x8ba   :  { %3452 = vmatprep.subr.bf16.mxu1 %v3749_v57 }
 0x8bd   :  { %3453 = vmatpush3.bf16.msra.mxu1 %v3749_v57 }
 0x8be   :  { %3454 = vmatprep.subr.bf16.mxu1 %v3750_v59 }
 0x8c1   :  { %3455 = vmatpush3.bf16.msra.mxu1 %v3750_v59 }
 0x8c2   :  { %3456 = vmatprep.subr.bf16.mxu1 %v3751_v60 }
 0x8c5   :  { %3457 = vmatpush3.bf16.msra.mxu1 %v3751_v60  ;;  %v3028_v60 = vld [vmem:[#allocation20 + $0x1] ss:$0 sm:$0xff] }
 0x8c6   :  { %3458 = vmatprep.subr.bf16.mxu1 %v3752_v61 }
 0x8c9   :  { %3459 = vmatpush3.bf16.msra.mxu1 %v3752_v61 }
 0x8ca   :  { %3460 = vmatprep.subr.bf16.mxu1 %v3753_v14 }
 0x8cd   :  { %3461 = vmatpush3.bf16.msra.mxu1 %v3753_v14 }
 0x8ce   :  { %3462 = vmatprep.subr.bf16.mxu1 %v3754_v15 }
 0x8d1   :  { %3463 = vmatpush3.bf16.msra.mxu1 %v3754_v15 }
 0x8d2   :  { %3464 = vmatprep.subr.bf16.mxu1 %v3755_v16 }
 0x8d5   :  { %3465 = vmatpush3.bf16.msra.mxu1 %v3755_v16 }
 0x8d6   :  { %3478 = vmatprep.subr.bf16.mxu1 %v4232_v0 }
 0x98b   :  { %v3428_v63 = vpop.f32.mrb[12].mxu1 }
 0x98c   :  { %v1331_v1 = vpop.f32.mrb[13].mxu1  ;;  %v1348_v3 = vadd.f32 %v3428_v63, %v4735_v9 }
 0x98d   :  { %v3429_v2 = vpop.f32.mrb[14].mxu1  ;;  %v1346_v6 = vadd.f32 %v4739_v12, %v1331_v1 }
 0x98e   :  { %v1349_v4 = vadd.f32 %v3429_v2, %v4737_v10  ;;  %v1334_v5 = vpop.f32.mrb[15].mxu1 }
 0x98f   :  { %v1347_v7 = vadd.f32 %v4741_v13, %v1334_v5 }
 0x990   :  { %v1368_v8 = vpack.c.bf16 %v1349_v4, %v1348_v3 }
 0x991   :  { %v1367_v11 = vpack.c.bf16 %v1347_v7, %v1346_v6 }
 0x993   :  { %3446 = vmatprep.mubr.bf16.mxu0 %v1367_v11 }
 0x994   :  { %3447 = vmatmul.mubr.bf16.vlgmr.msra.gmra.mrb[16].mxu0 %v1368_v8  ;;  %v3029_v8 = vld [vmem:[#allocation22 + $0x1] ss:$0 sm:$0xff] }
 0x995   :  { %3474 = vmatprep.mubr.msk.bf16.mxu0 %vm4233_vm0, %v4232_v0 }
 0xa67   :  { %v3448_v18 = vpop.f32.mrb[16].mxu0 }
 0xa68   :  { %v1468_v22 = vadd.f32 %v3448_v18, %v3008_v17  ;;  %v1459_v23 = vpop.f32.mrb[17].mxu0 }
 0xa69   :  { %v1460_v26 = vadd.f32 %v3008_v17, %v1459_v23  ;;  %v3449_v27 = vpop.f32.mrb[18].mxu0 }
 0xa6a   :  { %v1484_v28 = vmul.f32 %v3017_v19, %v1468_v22  ;;  %v1471_v29 = vadd.f32 %v3449_v27, %v3008_v17  ;;  %v1462_v32 = vpop.f32.mrb[19].mxu0  ;;  %v3763_v27 = vld [vmem:[#allocation23 + $0x78] sm:$0xff]  }
 0xa6b   :  { %v1482_v33 = vmul.f32 %v3017_v19, %v1460_v26  ;;  %v1463_v20 = vadd.f32 %v3008_v17, %v1462_v32  ;;  %v3762_v26 = vld [vmem:[#allocation23 + $0x70] sm:$0xff]  }
 0xa6c   :  { %v1496_v34 = vadd.f32 %v3018_v24, %v1484_v28  ;;  %v1485_v36 = vmul.f32 %v3017_v19, %v1471_v29  ;;  %v3764_v28 = vld [vmem:[#allocation26 + $0x40] sm:$0xff]   ;;  %v3765_v29 = vld [vmem:[#allocation26 + $0x48] sm:$0xff]   ;;  %v3766_v32 = vld [vmem:[#allocation26 + $0x50] sm:$0xff]  }
 0xa6d   :  { %v1494_v37 = vadd.f32 %v3018_v24, %v1482_v33  ;;  %v1483_v38 = vmul.f32 %v3017_v19, %v1463_v20  ;;  %v3767_v33 = vld [vmem:[#allocation26 + $0x58] sm:$0xff]   ;;  %v3768_v20 = vld [vmem:[#allocation26 + $0x60] sm:$0xff]  }
 0xa6e   :  { %v1497_v39 = vadd.f32 %v3018_v24, %v1485_v36  ;;  %v1500_v43 = vmax.f32 %v1496_v34, 0.0 }
 0xa6f   :  { %v1495_v42 = vadd.f32 %v3018_v24, %v1483_v38  ;;  %v1498_v45 = vmax.f32 %v1494_v37, 0.0 }
 0xa70   :  { %v1501_v44 = vmax.f32 %v1497_v39, 0.0 }
 0xa71   :  { %v1499_v46 = vmax.f32 %v1495_v42, 0.0 }
 0xa72   :  { %v1520_v30 = vpack.c.bf16 %v1501_v44, %v1500_v43  ;;  %v3769_v44 = vld [vmem:[#allocation26 + $0x68] sm:$0xff]  }
 0xa73   :  { %v1519_v31 = vpack.c.bf16 %v1499_v46, %v1498_v45  ;;  %v3770_v45 = vld [vmem:[#allocation26 + $0x70] sm:$0xff]   ;;  %v3771_v46 = vld [vmem:[#allocation26 + $0x78] sm:$0xff]  }
 0xa75   :  { %3466 = vmatprep.mubr.bf16.mxu1 %v1519_v31 }
 0xa76   :  { %3467 = vmatmul.mubr.bf16.vlgmr.msra.gmra.mrb[16].mxu1 %v1520_v30  ;;  %v3031_v30 = vld [vmem:[#allocation25 + $0x1] ss:$0 sm:$0xff] }
 0xa77   :  { %3494 = vmatprep.mubr.msk.bf16.mxu1 %vm4233_vm0, %v4232_v0  ;;  %3479 = vmatpush3.bf16.msra.mxu1 %v3756_v47  ;;  %v3041_v47 = vld [vmem:[%s5009_s18 + $0x1] ss:$0 sm:$0xff] }
 0xa78   :  { %3480 = vmatprep.subr.bf16.mxu1 %v4232_v0 }
 0xa7b   :  { %3481 = vmatpush3.bf16.msra.mxu1 %v3757_v48 }
 0xa7c   :  { %3482 = vmatprep.subr.bf16.mxu1 %v4232_v0 }
 0xa7f   :  { %3483 = vmatpush3.bf16.msra.mxu1 %v3758_v50 }
 0xa80   :  { %3484 = vmatprep.subr.bf16.mxu1 %v4232_v0 }
 0xa83   :  { %3485 = vmatpush3.bf16.msra.mxu1 %v3759_v52 }
 0xa84   :  { %3486 = vmatprep.subr.bf16.mxu1 %v4232_v0 }
 0xa87   :  { %3487 = vmatpush3.bf16.msra.mxu1 %v3760_v53 }
 0xa88   :  { %3488 = vmatprep.subr.bf16.mxu1 %v4232_v0 }
 0xa8b   :  { %3489 = vmatpush3.bf16.msra.mxu1 %v3761_v54 }
 0xa8c   :  { %3490 = vmatprep.subr.bf16.mxu1 %v4232_v0 }
 0xa8f   :  { %3491 = vmatpush3.bf16.msra.mxu1 %v3762_v26  ;;  %v3772_v26 = vld [vmem:[#allocation11 + $0x80] sm:$0xff]  }
 0xa90   :  { %3492 = vmatprep.subr.bf16.mxu1 %v4232_v0 }
 0xa93   :  { %3493 = vmatpush3.bf16.msra.mxu1 %v3763_v27  ;;  %v3773_v27 = vld [vmem:[#allocation11 + $0x88] sm:$0xff]  }
 0xb49   :  { %v3468_v56 = vpop.f32.mrb[16].mxu1 }
 0xb4a   :  { %v1620_v57 = vadd.f32 %v3468_v56, %v3019_v55  ;;  %v1611_v59 = vpop.f32.mrb[17].mxu1 }
 0xb4b   :  { %v1612_v61 = vadd.f32 %v3019_v55, %v1611_v59  ;;  %v3469_v63 = vpop.f32.mrb[18].mxu1 }
 0xb4c   :  { %v1628_v1 = vmax.f32 %v1620_v57, 0.0  ;;  %v1623_v2 = vadd.f32 %v3469_v63, %v3019_v55  ;;  %v1614_v3 = vpop.f32.mrb[19].mxu1 }
 0xb4d   :  { %v1626_v4 = vmax.f32 %v1612_v61, 0.0  ;;  %v1615_v5 = vadd.f32 %v3019_v55, %v1614_v3 }
 0xb4e   :  { %v1640_v6 = vmul.f32 %v3028_v60, %v1628_v1  ;;  %v1629_v7 = vmax.f32 %v1623_v2, 0.0  ;;  %v3045_v1 = vld [vmem:[%s5012_s21 + $0x1] ss:$0 sm:$0xff] }
 0xb4f   :  { %v1638_v11 = vmul.f32 %v3028_v60, %v1626_v4  ;;  %v1627_v14 = vmax.f32 %v1615_v5, 0.0  ;;  %v3055_v5 = vld [vmem:[%s5013_s22 + $0x1] ss:$0 sm:$0xff] }
 0xb50   :  { %v1641_v15 = vmul.f32 %v3028_v60, %v1629_v7  ;;  %v1652_v17 = vadd.f32 %v3029_v8, %v1640_v6 }
 0xb51   :  { %v1639_v16 = vmul.f32 %v3028_v60, %v1627_v14  ;;  %v1650_v19 = vadd.f32 %v3029_v8, %v1638_v11  ;;  %v3057_v14 = vld [vmem:[%s5014_s23 + $0x1] ss:$0 sm:$0xff] }
 0xb52   :  { %v1653_v18 = vadd.f32 %v3029_v8, %v1641_v15 }
 0xb53   :  { %v1651_v22 = vadd.f32 %v3029_v8, %v1639_v16 }
 0xb54   :  { %v1655_v23 = vpack.c.bf16 %v1653_v18, %v1652_v17 }
 0xb55   :  { %v1654_v24 = vpack.c.bf16 %v1651_v22, %v1650_v19 }
 0xb57   :  { %3471 = vmatpush3.bf16.msra.mxu0 %v1654_v24 }
 0xb58   :  { %3472 = vmatprep.subr.bf16.mxu0 %v4232_v0 }
 0xb5b   :  { %3473 = vmatpush3.bf16.msra.mxu0 %v1655_v23 }
 0xb5c   :  { %3498 = vmatprep.subr.bf16.mxu0 %v4232_v0 }
 0xb5e   :  { %3475 = vmatmul.mubr.msk.bf16.vlgmr.msra.gmra.mrb[20].mxu0 %vm504_vm4, %v4756_v35 }
 0xb5f   :  { %3514 = vmatprep.mubr.msk.bf16.mxu0 %vm4233_vm0, %v4232_v0  ;;  %3499 = vmatpush3.bf16.msra.mxu0 %v3764_v28  ;;  %v3774_v28 = vld [vmem:[#allocation11 + $0x90] sm:$0xff]  }
 0xb60   :  { %3500 = vmatprep.subr.bf16.mxu0 %v4232_v0 }
 0xb63   :  { %3501 = vmatpush3.bf16.msra.mxu0 %v3765_v29  ;;  %v3775_v29 = vld [vmem:[#allocation11 + $0x98] sm:$0xff]  }
 0xb64   :  { %3502 = vmatprep.subr.bf16.mxu0 %v4232_v0 }
 0xb67   :  { %3503 = vmatpush3.bf16.msra.mxu0 %v3766_v32 }
 0xb68   :  { %3504 = vmatprep.subr.bf16.mxu0 %v4232_v0 }
 0xb6b   :  { %3505 = vmatpush3.bf16.msra.mxu0 %v3767_v33 }
 0xb6c   :  { %3506 = vmatprep.subr.bf16.mxu0 %v4232_v0 }
 0xb6f   :  { %3507 = vmatpush3.bf16.msra.mxu0 %v3768_v20 }
 0xb70   :  { %3508 = vmatprep.subr.bf16.mxu0 %v4232_v0 }
 0xb73   :  { %3509 = vmatpush3.bf16.msra.mxu0 %v3769_v44 }
 0xb74   :  { %3510 = vmatprep.subr.bf16.mxu0 %v4232_v0 }
 0xb77   :  { %3511 = vmatpush3.bf16.msra.mxu0 %v3770_v45 }
 0xb78   :  { %3512 = vmatprep.subr.bf16.mxu0 %v4232_v0 }
 0xb7b   :  { %3513 = vmatpush3.bf16.msra.mxu0 %v3771_v46 }
 0xb7c   :  { %3530 = vmatprep.subr.bf16.mxu0 %v3772_v26 }
 0xc31   :  { %v1690_v34 = vpop.f32.mrb[20].mxu0 }
 0xc32   :  { %v3476_v36 = vpop.f32.mrb[21].mxu0  ;;  %v1697_v38 = vadd.f32 %v1690_v34, %v4797_v40 }
 0xc33   :  { %v1693_v37 = vpop.f32.mrb[22].mxu0 }
 0xc34   :  { %v1698_v39 = vadd.f32 %v1693_v37, %v4800_v41  ;;  %v3477_v42 = vpop.f32.mrb[23].mxu0  ;;  %v3778_v37 = vld [vmem:[#allocation11 + $0xb0] sm:$0xff]  }
 0xc36   :  { %v1716_v43 = vpack.c.bf16 %v1698_v39, %v1697_v38  ;;  %v3779_v38 = vld [vmem:[#allocation11 + $0xb8] sm:$0xff]  }
 0xc37   :  { %v3781_v39 = vld [vmem:[#allocation17 + $0x88] sm:$0xff]  }
 0xc38   :  { %3495 = vmatmul.mubr.bf16.vlgmr.msra.gmra.mrb[20].mxu1 %v1716_v43 }
 0xc39   :  { %3520 = vmatprep.mubr.msk.bf16.mxu1 %vm509_vm3, %v4682_v25  ;;  %v3043_v25 = vld [vmem:[%s5010_s19 + $0x1] ss:$0 sm:$0xff] }
 0xd0b   :  { %v1807_v31 = vpop.f32.mrb[20].mxu1 }
 0xd0c   :  { %v1808_v48 = vadd.f32 %v3031_v30, %v1807_v31  ;;  %v3496_v50 = vpop.f32.mrb[21].mxu1 }
 0xd0d   :  { %v1810_v52 = vpop.f32.mrb[22].mxu1 }
 0xd0e   :  { %v1822_v53 = vmul.f32 %v3041_v47, %v1808_v48  ;;  %v1811_v54 = vadd.f32 %v3031_v30, %v1810_v52  ;;  %v3497_v55 = vpop.f32.mrb[23].mxu1  ;;  %v3786_v52 = vld [vmem:[#allocation17 + $0xb0] sm:$0xff]  }
 0xd0f   :  { %v3077_v55 = vld [vmem:[#allocation16 + $0x2] ss:$0 sm:$0xff] }
 0xd10   :  { %v1832_v56 = vadd.f32 %v3043_v25, %v1822_v53  ;;  %v1823_v57 = vmul.f32 %v3041_v47, %v1811_v54 }
 0xd12   :  { %v1833_v59 = vadd.f32 %v3043_v25, %v1823_v57  ;;  %v1834_v60 = vmax.f32 %v1832_v56, 0.0  ;;  %v3785_v25 = vld [vmem:[#allocation17 + $0xa8] sm:$0xff]  }
 0xd14   :  { %v1835_v61 = vmax.f32 %v1833_v59, 0.0 }
 0xd16   :  { %v1853_v63 = vpack.c.bf16 %v1835_v61, %v1834_v60 }
 0xd18   :  { %3515 = vmatmul.mubr.bf16.vlgmr.msra.gmra.mrb[24].mxu0 %v1853_v63 }
 0xd19   :  { %3531 = vmatpush3.bf16.msra.mxu0 %v3772_v26 }
 0xd1a   :  { %3532 = vmatprep.subr.bf16.mxu0 %v3773_v27 }
 0xd1d   :  { %3533 = vmatpush3.bf16.msra.mxu0 %v3773_v27  ;;  %v3087_v27 = vld [vmem:[#allocation20 + $0x2] ss:$0 sm:$0xff] }
 0xd1e   :  { %3534 = vmatprep.subr.bf16.mxu0 %v3774_v28 }
 0xd21   :  { %3535 = vmatpush3.bf16.msra.mxu0 %v3774_v28 }
 0xd22   :  { %3536 = vmatprep.subr.bf16.mxu0 %v3775_v29 }
 0xd25   :  { %3537 = vmatpush3.bf16.msra.mxu0 %v3775_v29 }
 0xdeb   :  { %v1944_v2 = vpop.f32.mrb[24].mxu0 }
 0xdec   :  { %v1945_v3 = vadd.f32 %v3045_v1, %v1944_v2  ;;  %v3516_v4 = vpop.f32.mrb[25].mxu0 }
 0xded   :  { %v1947_v6 = vpop.f32.mrb[26].mxu0 }
 0xdee   :  { %v1951_v7 = vmax.f32 %v1945_v3, 0.0  ;;  %v1948_v8 = vadd.f32 %v3045_v1, %v1947_v6  ;;  %v3517_v11 = vpop.f32.mrb[27].mxu0 }
 0xdf0   :  { %v1961_v15 = vmul.f32 %v3055_v5, %v1951_v7  ;;  %v1952_v16 = vmax.f32 %v1948_v8, 0.0 }
 0xdf2   :  { %v1971_v17 = vadd.f32 %v3057_v14, %v1961_v15  ;;  %v1962_v18 = vmul.f32 %v3055_v5, %v1952_v16 }
 0xdf4   :  { %v1972_v19 = vadd.f32 %v3057_v14, %v1962_v18  ;;  %v4867_v22 = vadd.f32 %v1971_v17, %v4797_v40  ;;  %v3776_v40 = vld [vmem:[#allocation11 + $0xa0] sm:$0xff]   ;;  %v3078_v18 = vld [vmem:[#allocation19 + $0x2] ss:$0 sm:$0xff] }
 0xdf5   :  { %3538 = vmatprep.subr.bf16.mxu0 %v3776_v40 }
 0xdf6   :  { %v4870_v23 = vadd.f32 %v1972_v19, %v4800_v41  ;;  %v3777_v41 = vld [vmem:[#allocation11 + $0xa8] sm:$0xff]   ;;  %3539 = vmatpush3.bf16.msra.mxu0 %v3776_v40 }
 0xdf7   :  { %3540 = vmatprep.subr.bf16.mxu0 %v3777_v41 }
 0xdf8   :  { %v3695_v24 = vpack.i.bf16 %v4870_v23, %v4867_v22  ;;  %v1985_v36 = vpack.c.bf16 %v4870_v23, %v4867_v22 }
 0xdfa   :  { %3696 = vrot.lane.b32.xlu0 %v3695_v24, %s4235_s4  ;;  %3541 = vmatpush3.bf16.msra.mxu0 %v3777_v41  ;;  %s4168_s4 = scalar_lea.vmem %s2909_s11, 128 }
 0xdfb   :  { %3542 = vmatprep.subr.bf16.mxu0 %v3778_v37  ;;  %p4169_p2 = scmp.ne.s32.totalorder %s2909_s11, %s4168_s4  ;;  %p4174_p4 = scmp.lt.s32.totalorder %s4168_s4, %s4168_s4 }
 0xdfd   :  { %p4175_p5 = por %p4174_p4, %p4173_p3 }
 0xdfe   :  { %3543 = vmatpush3.bf16.msra.mxu0 %v3778_v37  ;;  %v3088_v37 = vld [vmem:[#allocation22 + $0x2] ss:$0 sm:$0xff] }
 0xdff   :  { %3544 = vmatprep.subr.bf16.mxu0 %v3779_v38  ;;  %p4176_p6 = pnand %p4175_p5, %p4169_p2 }
 0xe02   :  { %3545 = vmatpush3.bf16.msra.mxu0 %v3779_v38 }
 0xe03   :  { %3570 = vmatprep.subr.bf16.mxu0 %v4232_v0 }
 0xe6c   :  { %v3697_v32 = vpop.permute.xlu0 %3696 }
 0xe6d   :  { %v3699_v33 = vunpack.i.h.bf16 %v3697_v32  ;;  %v3698_v20 = vunpack.i.l.bf16 %v3697_v32 }
 0xe6f   :  { %v3061_v34 = vpack.c.bf16 %v3699_v33, %v3698_v20 }
 0xe71   :  { %3518 = vmatprep.subr.msk.bf16.mxu1 %vm4704_vm8, %v3061_v34 }
 0xe72   :  { %3519 = vmatpush3.bf16.msk.msra.mxu1 %vm4704_vm8, %v3061_v34 }
 0xe73   :  { %3524 = vmatprep.subr.bf16.mxu1 %v1985_v36 }
 0xe75   :  { %3521 = vmatmul.mubr.msk.bf16.vlgmr.msra.gmra.mrb[24].mxu1 %vm509_vm3, %v4708_v51  ;;  %v3782_v51 = vld [vmem:[#allocation17 + $0x90] sm:$0xff]  }
 0xe76   :  { %3525 = vmatpush3.bf16.msra.mxu1 %v1985_v36  ;;  %3526 = vmatprep.mubr.msk.bf16.mxu1 %vm509_vm3, %v4723_v58  ;;  %v3783_v58 = vld [vmem:[#allocation17 + $0x98] sm:$0xff]  }
 0xe77   :  { %3550 = vmatprep.subr.bf16.mxu1 %v3780_v49 }
 0xe81   :  { %3527 = vmatmul.mubr.msk.bf16.vlgmr.msra.gmra.mrb[24].mxu1 %vm509_vm3, %v4730_v62  ;;  %v3784_v62 = vld [vmem:[#allocation17 + $0xa0] sm:$0xff]  }
 0xe82   :  { %3551 = vmatpush3.bf16.msra.mxu1 %v3780_v49 }
 0xe83   :  { %3552 = vmatprep.subr.bf16.mxu1 %v3781_v39 }
 0xe86   :  { %3553 = vmatpush3.bf16.msra.mxu1 %v3781_v39 }
 0xe87   :  { %3554 = vmatprep.subr.bf16.mxu1 %v3782_v51 }
 0xe8a   :  { %3555 = vmatpush3.bf16.msra.mxu1 %v3782_v51 }
 0xe8b   :  { %3556 = vmatprep.subr.bf16.mxu1 %v3783_v58 }
 0xe8e   :  { %3557 = vmatpush3.bf16.msra.mxu1 %v3783_v58 }
 0xe8f   :  { %3558 = vmatprep.subr.bf16.mxu1 %v3784_v62 }
 0xe92   :  { %3559 = vmatpush3.bf16.msra.mxu1 %v3784_v62 }
 0xe93   :  { %3560 = vmatprep.subr.bf16.mxu1 %v3785_v25 }
 0xe96   :  { %3561 = vmatpush3.bf16.msra.mxu1 %v3785_v25  ;;  %v3795_v25 = vld [vmem:[#allocation23 + $0xb8] sm:$0xff]  }
 0xe97   :  { %3562 = vmatprep.subr.bf16.mxu1 %v3786_v52 }
 0xe9a   :  { %3563 = vmatpush3.bf16.msra.mxu1 %v3786_v52  ;;  %v3796_v52 = vld [vmem:[#allocation26 + $0x80] sm:$0xff]  }
 0xf54   :  { %v3528_v42 = vpop.f32.mrb[24].mxu1 }
 0xf55   :  { %v2070_v43 = vpop.f32.mrb[25].mxu1  ;;  %v2087_v45 = vadd.f32 %v3528_v42, %v4735_v9  ;;  %v3787_v9 = vld [vmem:[#allocation17 + $0xb8] sm:$0xff]  }
 0xf56   :  { %v3529_v44 = vpop.f32.mrb[26].mxu1  ;;  %v2085_v31 = vadd.f32 %v4739_v12, %v2070_v43  ;;  %3564 = vmatprep.subr.bf16.mxu1 %v3787_v9 }
 0xf57   :  { %v2088_v46 = vadd.f32 %v3529_v44, %v4737_v10  ;;  %v2073_v30 = vpop.f32.mrb[27].mxu1  ;;  %3565 = vmatpush3.bf16.msra.mxu1 %v3787_v9  ;;  %v3067_v10 = vld [vmem:[#allocation13 + $0x2] ss:$0 sm:$0xff]  ;;  %v3797_v9 = vld [vmem:[#allocation26 + $0x88] sm:$0xff]  }
 0xf58   :  { %v2086_v47 = vadd.f32 %v4741_v13, %v2073_v30  ;;  %3598 = vmatprep.subr.bf16.mxu1 %v4232_v0  ;;  %v3076_v13 = vld [vmem:[#allocation14 + $0x2] ss:$0 sm:$0xff] }
 0xf59   :  { %v2107_v48 = vpack.c.bf16 %v2088_v46, %v2087_v45  ;;  %v3788_v46 = vld [vmem:[#allocation23 + $0x80] sm:$0xff]   ;;  %v3789_v30 = vld [vmem:[#allocation23 + $0x88] sm:$0xff]  }
 0xf5a   :  { %v2106_v50 = vpack.c.bf16 %v2086_v47, %v2085_v31  ;;  %v3790_v31 = vld [vmem:[#allocation23 + $0x90] sm:$0xff]   ;;  %v3791_v47 = vld [vmem:[#allocation23 + $0x98] sm:$0xff]  }
 0xf5c   :  { %3546 = vmatprep.mubr.bf16.mxu0 %v2106_v50  ;;  %v3794_v50 = vld [vmem:[#allocation23 + $0xb0] sm:$0xff]  }
 0xf5d   :  { %3547 = vmatmul.mubr.bf16.vlgmr.msra.gmra.mrb[28].mxu0 %v2107_v48  ;;  %v3792_v48 = vld [vmem:[#allocation23 + $0xa0] sm:$0xff]  }
 0xf5e   :  { %3574 = vmatprep.mubr.msk.bf16.mxu0 %vm4233_vm0, %v4232_v0 }
0x1030   :  { %v3548_v12 = vpop.f32.mrb[28].mxu0 }
0x1031   :  { %v2207_v53 = vadd.f32 %v3548_v12, %v3067_v10  ;;  %v2198_v54 = vpop.f32.mrb[29].mxu0  ;;  %v3799_v12 = vld [vmem:[#allocation26 + $0x98] sm:$0xff]  }
0x1032   :  { %v2199_v56 = vadd.f32 %v3067_v10, %v2198_v54  ;;  %v3549_v57 = vpop.f32.mrb[30].mxu0 }
0x1033   :  { %v2223_v59 = vmul.f32 %v3076_v13, %v2207_v53  ;;  %v2210_v60 = vadd.f32 %v3549_v57, %v3067_v10  ;;  %v2201_v61 = vpop.f32.mrb[31].mxu0 }
0x1034   :  { %v2221_v63 = vmul.f32 %v3076_v13, %v2199_v56  ;;  %v2202_v1 = vadd.f32 %v3067_v10, %v2201_v61  ;;  %v3798_v10 = vld [vmem:[#allocation26 + $0x90] sm:$0xff]   ;;  %v3801_v61 = vld [vmem:[#allocation26 + $0xa8] sm:$0xff]  }
0x1035   :  { %v2235_v2 = vadd.f32 %v3077_v55, %v2223_v59  ;;  %v2224_v3 = vmul.f32 %v3076_v13, %v2210_v60 }
0x1036   :  { %v2233_v4 = vadd.f32 %v3077_v55, %v2221_v63  ;;  %v2222_v5 = vmul.f32 %v3076_v13, %v2202_v1  ;;  %v3800_v13 = vld [vmem:[#allocation26 + $0xa0] sm:$0xff]   ;;  %v3802_v63 = vld [vmem:[#allocation26 + $0xb0] sm:$0xff]   ;;  %v3803_v1 = vld [vmem:[#allocation26 + $0xb8] sm:$0xff]  }
0x1037   :  { %v2236_v6 = vadd.f32 %v3077_v55, %v2224_v3  ;;  %v2239_v8 = vmax.f32 %v2235_v2, 0.0  ;;  %v3090_v2 = vld [vmem:[#allocation25 + $0x2] ss:$0 sm:$0xff] }
0x1038   :  { %v2234_v7 = vadd.f32 %v3077_v55, %v2222_v5  ;;  %v2237_v14 = vmax.f32 %v2233_v4, 0.0  ;;  %v3100_v4 = vld [vmem:[%s5009_s18 + $0x2] ss:$0 sm:$0xff] }
0x1039   :  { %v2240_v11 = vmax.f32 %v2236_v6, 0.0 }
0x103a   :  { %v2238_v15 = vmax.f32 %v2234_v7, 0.0  ;;  %v3102_v7 = vld [vmem:[%s5010_s19 + $0x2] ss:$0 sm:$0xff] }
0x103b   :  { %v2259_v16 = vpack.c.bf16 %v2240_v11, %v2239_v8 }
0x103c   :  { %v2258_v17 = vpack.c.bf16 %v2238_v15, %v2237_v14 }
0x103e   :  { %3566 = vmatprep.mubr.bf16.mxu1 %v2258_v17 }
0x103f   :  { %3567 = vmatmul.mubr.bf16.vlgmr.msra.gmra.mrb[28].mxu1 %v2259_v16 }
0x1040   :  { %3614 = vmatprep.mubr.msk.bf16.mxu1 %vm4233_vm0, %v4232_v0  ;;  %3599 = vmatpush3.bf16.msra.mxu1 %v3796_v52 }
0x1041   :  { %3600 = vmatprep.subr.bf16.mxu1 %v4232_v0 }
0x1044   :  { %3601 = vmatpush3.bf16.msra.mxu1 %v3797_v9 }
0x1045   :  { %3602 = vmatprep.subr.bf16.mxu1 %v4232_v0 }
0x1048   :  { %3603 = vmatpush3.bf16.msra.mxu1 %v3798_v10 }
0x1049   :  { %3604 = vmatprep.subr.bf16.mxu1 %v4232_v0 }
0x104c   :  { %3605 = vmatpush3.bf16.msra.mxu1 %v3799_v12 }
0x104d   :  { %3606 = vmatprep.subr.bf16.mxu1 %v4232_v0 }
0x1050   :  { %3607 = vmatpush3.bf16.msra.mxu1 %v3800_v13 }
0x1051   :  { %3608 = vmatprep.subr.bf16.mxu1 %v4232_v0 }
0x1054   :  { %3609 = vmatpush3.bf16.msra.mxu1 %v3801_v61 }
0x1055   :  { %3610 = vmatprep.subr.bf16.mxu1 %v4232_v0 }
0x1058   :  { %3611 = vmatpush3.bf16.msra.mxu1 %v3802_v63 }
0x1059   :  { %3612 = vmatprep.subr.bf16.mxu1 %v4232_v0 }
0x105c   :  { %3613 = vmatpush3.bf16.msra.mxu1 %v3803_v1 }
0x105d   :  { %3624 = vmatprep.subr.bf16.mxu1 %v4232_v0 }
0x1112   :  { %v3568_v19 = vpop.f32.mrb[28].mxu1 }
0x1113   :  { %v2359_v24 = vadd.f32 %v3568_v19, %v3078_v18  ;;  %v2350_v26 = vpop.f32.mrb[29].mxu1 }
0x1114   :  { %v2351_v28 = vadd.f32 %v3078_v18, %v2350_v26  ;;  %v3569_v29 = vpop.f32.mrb[30].mxu1 }
0x1115   :  { %v2367_v40 = vmax.f32 %v2359_v24, 0.0  ;;  %v2362_v41 = vadd.f32 %v3569_v29, %v3078_v18  ;;  %v2353_v32 = vpop.f32.mrb[31].mxu1 }
0x1116   :  { %v2365_v33 = vmax.f32 %v2351_v28, 0.0  ;;  %v2354_v20 = vadd.f32 %v3078_v18, %v2353_v32 }
0x1117   :  { %v2379_v34 = vmul.f32 %v3087_v27, %v2367_v40  ;;  %v2368_v36 = vmax.f32 %v2362_v41, 0.0  ;;  %v3114_v41 = vld [vmem:[%s5013_s22 + $0x2] ss:$0 sm:$0xff] }
0x1118   :  { %v2377_v38 = vmul.f32 %v3087_v27, %v2365_v33  ;;  %v2366_v49 = vmax.f32 %v2354_v20, 0.0 }
0x1119   :  { %v2380_v39 = vmul.f32 %v3087_v27, %v2368_v36  ;;  %v2391_v58 = vadd.f32 %v3088_v37, %v2379_v34  ;;  %v3116_v36 = vld [vmem:[%s5014_s23 + $0x2] ss:$0 sm:$0xff]  ;;  %s5061_s23 = sld [smem:[#allocation50_spill]] }
0x111a   :  { %v2378_v51 = vmul.f32 %v3087_v27, %v2366_v49  ;;  %v2389_v42 = vadd.f32 %v3088_v37, %v2377_v38  ;;  %v3104_v27 = vld [vmem:[%s5012_s21 + $0x2] ss:$0 sm:$0xff] }
0x111b   :  { %v2392_v62 = vadd.f32 %v3088_v37, %v2380_v39 }
0x111c   :  { %v2390_v43 = vadd.f32 %v3088_v37, %v2378_v51  ;;  %v3117_v51 = vsel %vm2714_vm15, 1.0, %v4232_v0 }
0x111d   :  { %v2394_v44 = vpack.c.bf16 %v2392_v62, %v2391_v58 }
0x111e   :  { %v2393_v45 = vpack.c.bf16 %v2390_v43, %v2389_v42 }
0x111f   :  { %v3806_v52 = vld [vmem:[%s5061_s23 + $0x10] sm:$0xff]   ;;  %v3807_v9 = vld [vmem:[%s5061_s23 + $0x18] sm:$0xff]   ;;  %v3808_v10 = vld [vmem:[%s5061_s23 + $0x20] sm:$0xff]  }
0x1120   :  { %3571 = vmatpush3.bf16.msra.mxu0 %v2393_v45  ;;  %v3809_v12 = vld [vmem:[%s5061_s23 + $0x28] sm:$0xff]   ;;  %v3810_v13 = vld [vmem:[%s5061_s23 + $0x30] sm:$0xff]  }
0x1121   :  { %3572 = vmatprep.subr.bf16.mxu0 %v4232_v0 }
0x1124   :  { %3573 = vmatpush3.bf16.msra.mxu0 %v2394_v44 }
0x1125   :  { %3578 = vmatprep.subr.bf16.mxu0 %v4232_v0 }
0x1127   :  { %3575 = vmatmul.mubr.msk.bf16.vlgmr.msra.gmra.mrb[32].mxu0 %vm504_vm4, %v4756_v35  ;;  %v3793_v35 = vld [vmem:[#allocation23 + $0xa8] sm:$0xff]  }
0x1128   :  { %3579 = vmatpush3.bf16.msra.mxu0 %v3788_v46  ;;  %3594 = vmatprep.mubr.msk.bf16.mxu0 %vm4233_vm0, %v4232_v0 }
0x1129   :  { %3580 = vmatprep.subr.bf16.mxu0 %v4232_v0 }
0x112c   :  { %3581 = vmatpush3.bf16.msra.mxu0 %v3789_v30 }
0x112d   :  { %3582 = vmatprep.subr.bf16.mxu0 %v4232_v0 }
0x1130   :  { %3583 = vmatpush3.bf16.msra.mxu0 %v3790_v31 }
0x1131   :  { %3584 = vmatprep.subr.bf16.mxu0 %v4232_v0 }
0x1134   :  { %3585 = vmatpush3.bf16.msra.mxu0 %v3791_v47 }
0x1135   :  { %3586 = vmatprep.subr.bf16.mxu0 %v4232_v0 }
0x1138   :  { %3587 = vmatpush3.bf16.msra.mxu0 %v3792_v48 }
0x1139   :  { %3588 = vmatprep.subr.bf16.mxu0 %v4232_v0 }
0x113c   :  { %3589 = vmatpush3.bf16.msra.mxu0 %v3793_v35 }
0x113d   :  { %3590 = vmatprep.subr.bf16.mxu0 %v4232_v0 }
0x1140   :  { %3591 = vmatpush3.bf16.msra.mxu0 %v3794_v50 }
0x1141   :  { %3592 = vmatprep.subr.bf16.mxu0 %v4232_v0 }
0x1144   :  { %3593 = vmatpush3.bf16.msra.mxu0 %v3795_v25 }
0x1145   :  { %3618 = vmatprep.subr.bf16.mxu0 %v4232_v0 }
0x11fa   :  { %v2429_v53 = vpop.f32.mrb[32].mxu0 }
0x11fb   :  { %v3576_v54 = vpop.f32.mrb[33].mxu0  ;;  %v2436_v56 = vadd.f32 %v2429_v53, %v4867_v22 }
0x11fc   :  { %v2432_v55 = vpop.f32.mrb[34].mxu0 }
0x11fd   :  { %v2437_v57 = vadd.f32 %v2432_v55, %v4870_v23  ;;  %v3577_v59 = vpop.f32.mrb[35].mxu0 }
0x11ff   :  { %v2455_v60 = vpack.c.bf16 %v2437_v57, %v2436_v56 }
0x1201   :  { %3595 = vmatmul.mubr.bf16.vlgmr.msra.gmra.mrb[36].mxu0 %v2455_v60 }
0x1202   :  { %3620 = vmatprep.mubr.msk.bf16.mxu0 %vm4233_vm0, %v4232_v0 }
0x12d4   :  { %v2546_v3 = vpop.f32.mrb[36].mxu0 }
0x12d5   :  { %v2547_v5 = vadd.f32 %v3090_v2, %v2546_v3  ;;  %v3596_v6 = vpop.f32.mrb[37].mxu0 }
0x12d6   :  { %v2549_v8 = vpop.f32.mrb[38].mxu0 }
0x12d7   :  { %v2561_v11 = vmul.f32 %v3100_v4, %v2547_v5  ;;  %v2550_v14 = vadd.f32 %v3090_v2, %v2549_v8  ;;  %v3597_v15 = vpop.f32.mrb[39].mxu0  ;;  %v2743_v2 = vld [vmem:[#allocation8] sm:$0xff] }
0x12d9   :  { %v2571_v16 = vadd.f32 %v3102_v7, %v2561_v11  ;;  %v2562_v17 = vmul.f32 %v3100_v4, %v2550_v14  ;;  %v2744_v4 = vpack.c.bf16 %v2743_v2, %v2743_v2  ;;  %v3119_v14 = vld [vmem:[%s5062_s25] ss:$0 sm:$0xff] }
0x12db   :  { %v2572_v18 = vadd.f32 %v3102_v7, %v2562_v17  ;;  %v2573_v19 = vmax.f32 %v2571_v16, 0.0 }
0x12dd   :  { %v2574_v24 = vmax.f32 %v2572_v18, 0.0 }
0x12df   :  { %v2592_v26 = vpack.c.bf16 %v2574_v24, %v2573_v19 }
0x12e1   :  { %3615 = vmatmul.mubr.bf16.vlgmr.msra.gmra.mrb[32].mxu1 %v2592_v26 }
0x12e2   :  { %3640 = vmatprep.mubr.msk.bf16.mxu1 %vm4233_vm0, %v4232_v0 }
0x13b4   :  { %v2683_v28 = vpop.f32.mrb[32].mxu1 }
0x13b5   :  { %v2684_v29 = vadd.f32 %v3104_v27, %v2683_v28  ;;  %v3616_v40 = vpop.f32.mrb[33].mxu1 }
0x13b6   :  { %v2686_v32 = vpop.f32.mrb[34].mxu1 }
0x13b7   :  { %v2690_v33 = vmax.f32 %v2684_v29, 0.0  ;;  %v2687_v20 = vadd.f32 %v3104_v27, %v2686_v32  ;;  %v3617_v34 = vpop.f32.mrb[35].mxu1 }
0x13b9   :  { %v2700_v37 = vmul.f32 %v3114_v41, %v2690_v33  ;;  %v2691_v38 = vmax.f32 %v2687_v20, 0.0 }
0x13bb   :  { %v2710_v49 = vadd.f32 %v3116_v36, %v2700_v37  ;;  %v2701_v39 = vmul.f32 %v3114_v41, %v2691_v38 }
0x13bd   :  { %v2711_v58 = vadd.f32 %v3116_v36, %v2701_v39  ;;  %v2712_v62 = vadd.f32 %v2710_v49, %v4867_v22  ;;  %v3804_v22 = vld [vmem:[%s5061_s23] sm:$0xff]  }
0x13be   :  { %3625 = vmatpush3.bf16.msra.mxu1 %v3804_v22 }
0x13bf   :  { %v2717_v42 = vmul.f32 %v3117_v51, %v2712_v62  ;;  %v2713_v43 = vadd.f32 %v2711_v58, %v4870_v23  ;;  %v3805_v23 = vld [vmem:[%s5061_s23 + $0x8] sm:$0xff]   ;;  %3626 = vmatprep.subr.bf16.mxu1 %v4232_v0 }
0x13c1   :  { %2719 = vadd.xlane.f32.xlu1 %v2717_v42  ;;  %v2718_v44 = vmul.f32 %v3117_v51, %v2713_v43 }
0x13c2   :  { %3627 = vmatpush3.bf16.msra.mxu1 %v3805_v23 }
0x13c3   :  { %2721 = vadd.xlane.f32.xlu0 %v2718_v44  ;;  %3628 = vmatprep.subr.bf16.mxu1 %v4232_v0 }
0x13c6   :  { %3629 = vmatpush3.bf16.msra.mxu1 %v3806_v52 }
0x13c7   :  { %3630 = vmatprep.subr.bf16.mxu1 %v4232_v0 }
0x13ca   :  { %3631 = vmatpush3.bf16.msra.mxu1 %v3807_v9 }
0x13cb   :  { %3632 = vmatprep.subr.bf16.mxu1 %v4232_v0 }
0x13ce   :  { %3633 = vmatpush3.bf16.msra.mxu1 %v3808_v10 }
0x13cf   :  { %3634 = vmatprep.subr.bf16.mxu1 %v4232_v0 }
0x13d2   :  { %3635 = vmatpush3.bf16.msra.mxu1 %v3809_v12 }
0x13d3   :  { %3636 = vmatprep.subr.bf16.mxu1 %v4232_v0 }
0x13d6   :  { %3637 = vmatpush3.bf16.msra.mxu1 %v3810_v13 }
0x13d7   :  { %3638 = vmatprep.subr.bf16.mxu1 %v4232_v0  ;;  %v3811_v0 = vld [vmem:[%s5061_s23 + $0x38] sm:$0xff]  }
0x13da   :  { %3639 = vmatpush3.bf16.msra.mxu1 %v3811_v0 }
0x144e   :  { %v2720_v45 = vpop.xlane.xlu1 %2719 }
0x144f   :  { %v2723_v46 = vmul.f32 0.03125, %v2720_v45 }
0x1450   :  { %v2722_v30 = vpop.xlane.xlu0 %2721 }
0x1451   :  { %v2725_v31 = vsub.f32 %v2712_v62, %v2723_v46  ;;  %v2724_v47 = vmul.f32 0.03125, %v2722_v30 }
0x1453   :  { %v2726_v48 = vsub.f32 %v2713_v43, %v2724_v47  ;;  %v2727_v21 = vmul.f32 %v3117_v51, %v2725_v31 }
0x1455   :  { %v2729_v35 = vmul.f32 %v2727_v21, %v2727_v21  ;;  %v2728_v50 = vmul.f32 %v3117_v51, %v2726_v48 }
0x1457   :  { %2731 = vadd.xlane.f32.xlu0 %v2729_v35  ;;  %v2730_v25 = vmul.f32 %v2728_v50, %v2728_v50 }
0x1459   :  { %2733 = vadd.xlane.f32.xlu1 %v2730_v25 }
0x14e4   :  { %v2732_v53 = vpop.xlane.xlu0 %2731 }
0x14e5   :  { %v2735_v54 = vmul.f32 0.03125, %v2732_v53 }
0x14e6   :  { %v2734_v55 = vpop.xlane.xlu1 %2733 }
0x14e7   :  { %v2737_v56 = vadd.f32 1e-05, %v2735_v54  ;;  %v2736_v57 = vmul.f32 0.03125, %v2734_v55 }
0x14e9   :  { %3812 = vrsqrt.f32 %v2737_v56  ;;  %v2738_v59 = vadd.f32 1e-05, %v2736_v57 }
0x14eb   :  { %3814 = vrsqrt.f32 %v2738_v59 }
0x14f3   :  { %v3813_v60 = vpop.eup %3812 }
0x14f4   :  { %v2741_v63 = vmul.f32 %v3813_v60, %v2727_v21 }
0x14f5   :  { %v3815_v61 = vpop.eup %3814 }
0x14f6   :  { %v2742_v1 = vmul.f32 %v3815_v61, %v2728_v50 }
0x14f8   :  { %v2745_v3 = vpack.c.bf16 %v2742_v1, %v2741_v63 }
0x14fa   :  { %3619 = vmatpush3.bf16.msra.mxu0 %v2745_v3 }
0x14fd   :  { %3621 = vmatmul.mubr.msk.bf16.vlgmr.msra.gmra.mrb[40].mxu0 %vm509_vm3, %v2744_v4 }
0x15d0   :  { %v2783_v5 = vpop.f32.mrb[40].mxu0 }
0x15d1   :  { %v2805_v6 = vpack.c.bf16 %v2783_v5, %v2783_v5  ;;  %v3622_v7 = vpop.f32.mrb[41].mxu0 }
0x15d2   :  { %v2786_v8 = vpop.f32.mrb[42].mxu0 }
0x15d3   :  { %v3623_v11 = vpop.f32.mrb[43].mxu0  ;;  %3641 = vmatmul.mubr.bf16.vlgmr.msra.gmra.mrb[36].mxu1 %v2805_v6 }
0x16a6   :  { %v2895_v15 = vpop.f32.mrb[36].mxu1 }
0x16a7   :  { %v2896_v16 = vadd.f32 %v3119_v14, %v2895_v15  ;;  %v3642_v17 = vpop.f32.mrb[37].mxu1 }
0x16a8   :  { %v2898_v18 = vpop.f32.mrb[38].mxu1 }
0x16a9   :  { %2901 = vst [vmem:[#allocation28] sm:$0xff] %v2896_v16  ;;  %v3643_v19 = vpop.f32.mrb[39].mxu1 }
0x16aa   :  { %4179 = shalt.err (!%p4176_p6)
}
0x16ab   :  { %s5063_s18 = sld [smem:[#allocation52_spill]] }
0x16b1   :  { %s4180_s0 = scalar_lea.hbm %s5063_s18, 128 }
0x16b2   :  { %p4181_p7 = scmp.ne.s32.totalorder %s5063_s18, %s4180_s0  ;;  %p4184_p8 = scmp.lt.u32.totalorder %s4180_s0, %s5063_s18 }
0x16b4   :  { %p4186_p9 = pnand %p4184_p8, %p4181_p7 }
0x16b6   :  { %4189 = shalt.err (!%p4186_p9)
}
0x16b7   :  { %2911 = dma.vmem_to_hbm [thread:$0]  %s2909_s11, 128, %s5063_s18, [#allocation4]  }
0x16b8   :  { %4208 = dma.done.wait [#allocation4], 128  }
0x16b9   :  { %4209 = vsyncadd [#allocation4], 4294967168 }
0x16ba   :  { %2915 = vsyncpa [#allocation3], 1 }
0x16bb   :  { %2916 = vsyncpa [#allocation6], 1 }
0x16bc   :  { %2917 = vsyncpa [#allocation9], 1 }
0x16bd   :  { %2918 = vsyncpa [#allocation12], 1 }
0x16be   :  { %2919 = vsyncpa [#allocation15], 1 }
0x16bf   :  { %2920 = vsyncpa [#allocation18], 1 }
0x16c0   :  { %2921 = vsyncpa [#allocation21], 1 }
0x16c1   :  { %2922 = vsyncpa [#allocation24], 1 }
0x16c2   :  { %2923 = vsyncpa [#allocation27], 1 }
0x16c3   :  { %2924 = vsyncpa [#allocation4], 1 }

</bundles_post_ra>
